<compile_context>
chip_gen: v6e
topology: v6e:2x2x1
jax: 0.10.0
libtpu: 0.0.40
codegen_flags: <defaults>
</compile_context>

<pallas_src>
import functools

import jax
import jax.numpy as jnp
from jax.experimental import pallas as pl
from jax.experimental.pallas import tpu as pltpu

_VMEM = pltpu.MemorySpace.VMEM


# ----------------------------------------------------------------------------
# Pallas kernels
# ----------------------------------------------------------------------------
def _linear_kernel(x_ref, w_ref, b_ref, o_ref, *, relu):
    """out = x @ w + b (f32 accumulate), optional ReLU.
    x:(tm,K) bf16, w:(K,N) bf16, b:(1,N) f32 -> o:(tm,N) o_ref.dtype."""
    acc = jnp.dot(x_ref[...], w_ref[...], preferred_element_type=jnp.float32)
    acc = acc + b_ref[...]
    if relu:
        acc = jnp.maximum(acc, 0.0)
    o_ref[...] = acc.astype(o_ref.dtype)


def _head_kernel(x_ref, w1_ref, b1_ref, w2_ref, b2_ref, o_ref, *, num_actions):
    """Fused dueling head.

    Layer 1: both 512-wide hidden layers run as one (feat, 1024) matmul.
    Layer 2: adv2 / val2 run as one matmul against a block-diagonal
             (1024, A+1) weight -> columns [0:A] = advantage, column A = value.
    Epilogue: q = val + adv - adv.mean()   (global mean, as in the PyTorch spec).
    """
    h = jnp.dot(x_ref[...], w1_ref[...], preferred_element_type=jnp.float32)
    h = jnp.maximum(h + b1_ref[...], 0.0)                       # (B, 1024) f32
    o2 = jnp.dot(h.astype(jnp.bfloat16), w2_ref[...],
                 preferred_element_type=jnp.float32)
    o2 = o2 + b2_ref[...]                                       # (B, A+1) f32
    adv = o2[:, :num_actions]                                   # (B, A)
    val = o2[:, num_actions:]                                   # (B, 1)
    o_ref[...] = (val + adv - jnp.mean(adv)).astype(o_ref.dtype)


# ----------------------------------------------------------------------------
# Pallas wrappers
# ----------------------------------------------------------------------------
def _round_up(x, m):
    return ((x + m - 1) // m) * m


def pallas_linear(x, w, b, *, relu, out_dtype):
    """x:(M,K) bf16, w:(K,N) bf16, b:(N,) f32 -> (M,N) out_dtype.

    M-tiled grid ("parallel") so large batch*spatial sizes pipeline and can be
    split across TensorCores; weights (constant index_map) stay resident."""
    M, K = x.shape
    N = w.shape[1]
    tm = min(512, _round_up(M, 8))
    Mp = _round_up(M, tm)
    if Mp != M:
        x = jnp.pad(x, ((0, Mp - M), (0, 0)))
    out = pl.pallas_call(
        functools.partial(_linear_kernel, relu=relu),
        out_shape=jax.ShapeDtypeStruct((Mp, N), out_dtype),
        grid=(Mp // tm,),
        in_specs=[
            pl.BlockSpec((tm, K), lambda i: (i, 0)),
            pl.BlockSpec((K, N), lambda i: (0, 0)),
            pl.BlockSpec((1, N), lambda i: (0, 0)),
        ],
        out_specs=pl.BlockSpec((tm, N), lambda i: (i, 0)),
        compiler_params=pltpu.CompilerParams(
            dimension_semantics=("parallel",),
            vmem_limit_bytes=32 * 1024 * 1024,
        ),
    )(x, w, b.reshape(1, N))
    return out if Mp == M else out[:M]


def pallas_dueling_head(feats, w1, b1, w2, b2, num_actions):
    """feats:(B,feat) bf16 -> q:(B,A) f32, in a single fused pallas_call."""
    B = feats.shape[0]
    return pl.pallas_call(
        functools.partial(_head_kernel, num_actions=num_actions),
        out_shape=jax.ShapeDtypeStruct((B, num_actions), jnp.float32),
        in_specs=[pl.BlockSpec(memory_space=_VMEM)] * 5,
        out_specs=pl.BlockSpec(memory_space=_VMEM),
        compiler_params=pltpu.CompilerParams(vmem_limit_bytes=32 * 1024 * 1024),
    )(feats, w1, b1.reshape(1, -1), w2, b2.reshape(1, -1))


# ----------------------------------------------------------------------------
# Glue: channels-last im2col (strided slicing / stack / reshape only).
# ----------------------------------------------------------------------------
def _im2col_nhwc(x, kh, kw, stride):
    """x:(B,H,W,C) -> (B*Ho*Wo, kh*kw*C), patch-row layout (i, j, c)."""
    B, H, W, C = x.shape
    Ho = (H - kh) // stride + 1
    Wo = (W - kw) // stride + 1
    cols = []
    for i in range(kh):
        for j in range(kw):
            cols.append(x[:, i:i + stride * Ho:stride, j:j + stride * Wo:stride, :])
    patches = jnp.stack(cols, axis=3)                       # (B, Ho, Wo, kh*kw, C)
    return patches.reshape(B * Ho * Wo, kh * kw * C), Ho, Wo


def conv2d_relu(x, w_packed, b, *, kh, kw, stride):
    """NHWC valid-padding conv + bias + ReLU. w_packed:(kh*kw*Cin, Cout) bf16."""
    B = x.shape[0]
    Cout = w_packed.shape[1]
    patches, Ho, Wo = _im2col_nhwc(x, kh, kw, stride)
    out = pallas_linear(patches, w_packed, b, relu=True, out_dtype=jnp.bfloat16)
    return out.reshape(B, Ho, Wo, Cout)                     # no transpose needed


# ----------------------------------------------------------------------------
# Parameters (PyTorch layout) + one-time repacking into kernel-ready layout.
# ----------------------------------------------------------------------------
def conv_out_size(h, k, s):
    return (h - k) // s + 1


def init_params(key, input_shape, num_actions):
    """Parameters in PyTorch layout (OIHW conv weights, (out,in) linear weights)."""
    C, H, W = input_shape
    h1, w1 = conv_out_size(H, 8, 4), conv_out_size(W, 8, 4)
    h2, w2 = conv_out_size(h1, 4, 2), conv_out_size(w1, 4, 2)
    h3, w3 = conv_out_size(h2, 3, 1), conv_out_size(w2, 3, 1)
    feat = 64 * h3 * w3

    ks = jax.random.split(key, 14)
    scale = 0.05
    p = {
        "conv1_w": jax.random.normal(ks[0], (32, C, 8, 8), jnp.float32) * scale,
        "conv1_b": jax.random.normal(ks[1], (32,), jnp.float32) * scale,
        "conv2_w": jax.random.normal(ks[2], (64, 32, 4, 4), jnp.float32) * scale,
        "conv2_b": jax.random.normal(ks[3], (64,), jnp.float32) * scale,
        "conv3_w": jax.random.normal(ks[4], (64, 64, 3, 3), jnp.float32) * scale,
        "conv3_b": jax.random.normal(ks[5], (64,), jnp.float32) * scale,
        "adv1_w": jax.random.normal(ks[6], (512, feat), jnp.float32) * scale,
        "adv1_b": jax.random.normal(ks[7], (512,), jnp.float32) * scale,
        "adv2_w": jax.random.normal(ks[8], (num_actions, 512), jnp.float32) * scale,
        "adv2_b": jax.random.normal(ks[9], (num_actions,), jnp.float32) * scale,
        "val1_w": jax.random.normal(ks[10], (512, feat), jnp.float32) * scale,
        "val1_b": jax.random.normal(ks[11], (512,), jnp.float32) * scale,
        "val2_w": jax.random.normal(ks[12], (1, 512), jnp.float32) * scale,
        "val2_b": jax.random.normal(ks[13], (1,), jnp.float32) * scale,
    }
    return p, feat


def prepare_params(p, input_shape, num_actions):
    """One-time repack: bf16, pre-transposed (K,N) matmul layout, concatenated
    head weights.  No transposes remain inside the jitted forward pass."""
    C, H, W = input_shape
    h1, w1 = conv_out_size(H, 8, 4), conv_out_size(W, 8, 4)
    h2, w2 = conv_out_size(h1, 4, 2), conv_out_size(w1, 4, 2)
    h3, w3 = conv_out_size(h2, 3, 1), conv_out_size(w2, 3, 1)
    feat = 64 * h3 * w3
    A = num_actions

    def pack_conv(w):  # (Cout,Cin,kh,kw) -> (kh*kw*Cin, Cout), matches im2col rows
        Cout, Cin, kh, kw = w.shape
        return (jnp.transpose(w, (2, 3, 1, 0))
                .reshape(kh * kw * Cin, Cout).astype(jnp.bfloat16))

    def pack_fc1(w):   # (512, 64*h3*w3) CHW order -> (feat, 512) NHWC-flatten order
        w4 = jnp.transpose(w.reshape(512, 64, h3, w3), (0, 2, 3, 1)).reshape(512, feat)
        return w4.T.astype(jnp.bfloat16)

    # Head layer 1: [adv1 | val1] -> one lane-dense (feat, 1024) weight.
    head_w1 = jnp.concatenate([pack_fc1(p["adv1_w"]), pack_fc1(p["val1_w"])], axis=1)
    head_b1 = jnp.concatenate([p["adv1_b"], p["val1_b"]], axis=0)
    # Head layer 2: block-diagonal (1024, A+1) so adv2 and val2 are one matmul.
    head_w2 = jnp.zeros((1024, A + 1), jnp.float32)
    head_w2 = head_w2.at[:512, :A].set(p["adv2_w"].T)
    head_w2 = head_w2.at[512:, A:].set(p["val2_w"].T)
    head_b2 = jnp.concatenate([p["adv2_b"], p["val2_b"]], axis=0)

    return {
        "conv1_w": pack_conv(p["conv1_w"]), "conv1_b": p["conv1_b"],
        "conv2_w": pack_conv(p["conv2_w"]), "conv2_b": p["conv2_b"],
        "conv3_w": pack_conv(p["conv3_w"]), "conv3_b": p["conv3_b"],
        "head_w1": head_w1, "head_b1": head_b1,
        "head_w2": head_w2.astype(jnp.bfloat16), "head_b2": head_b2,
    }


# ----------------------------------------------------------------------------
# Dueling DQN forward (4 pallas_calls total: 3 conv matmuls + 1 fused head)
# ----------------------------------------------------------------------------
def dueling_dqn_forward(params, x):
    """x: (B, C, H, W) float32 (PyTorch NCHW). Returns (B, num_actions) f32."""
    # TODO(synk): end-state would fuse the 3 conv matmuls into the head kernel
    # too; kept as separate M-tiled calls because strided window extraction
    # (im2col) is done as XLA slicing glue rather than in-kernel strided gather.
    B = x.shape[0]
    x = jnp.transpose(x, (0, 2, 3, 1)).astype(jnp.bfloat16)   # one-time NCHW->NHWC
    x = conv2d_relu(x, params["conv1_w"], params["conv1_b"], kh=8, kw=8, stride=4)
    x = conv2d_relu(x, params["conv2_w"], params["conv2_b"], kh=4, kw=4, stride=2)
    x = conv2d_relu(x, params["conv3_w"], params["conv3_b"], kh=3, kw=3, stride=1)
    feats = x.reshape(B, -1)                                   # NHWC flatten (matches head_w1)
    num_actions = params["head_w2"].shape[1] - 1
    return pallas_dueling_head(feats, params["head_w1"], params["head_b1"],
                               params["head_w2"], params["head_b2"], num_actions)


# ----------------------------------------------------------------------------
# Pure-JAX f32 reference (PyTorch-layout weights) for a sanity check
# ----------------------------------------------------------------------------
def reference_forward(params, x):
    def conv(x, w, b, s):
        y = jax.lax.conv_general_dilated(
            x, w, window_strides=(s, s), padding="VALID",
            dimension_numbers=("NCHW", "OIHW", "NCHW"))
        return jax.nn.relu(y + b[None, :, None, None])

    B = x.shape[0]
    x = conv(x, params["conv1_w"], params["conv1_b"], 4)
    x = conv(x, params["conv2_w"], params["conv2_b"], 2)
    x = conv(x, params["conv3_w"], params["conv3_b"], 1)
    x = x.reshape(B, -1)
    adv = jax.nn.relu(x @ params["adv1_w"].T + params["adv1_b"])
    adv = adv @ params["adv2_w"].T + params["adv2_b"]
    val = jax.nn.relu(x @ params["val1_w"].T + params["val1_b"])
    val = val @ params["val2_w"].T + params["val2_b"]
    return val + adv - adv.mean()


# ----------------------------------------------------------------------------
if __name__ == "__main__":
    key = jax.random.PRNGKey(0)
    pkey, xkey = jax.random.split(key)

    # Small Atari-like input: batch=2, 4 stacked frames, 44x44 spatial.
    # conv chain: 44 -> 10 -> 4 -> 2  => feature size 64*2*2 = 256.
    input_shape = (4, 44, 44)
    num_actions = 6
    batch = 2

    params, feat = init_params(pkey, input_shape, num_actions)
    packed = prepare_params(params, input_shape, num_actions)
    x = jax.random.normal(xkey, (batch,) + input_shape, jnp.float32)

    fwd = jax.jit(dueling_dqn_forward)
    out = jax.block_until_ready(fwd(packed, x))

    ref = jax.block_until_ready(reference_forward(params, x))
    assert out.shape == (batch, num_actions), out.shape
    # bf16 MXU operands (f32 accumulation) vs an f32 reference -> looser tolerance.
    assert jnp.allclose(out, ref, rtol=5e-2, atol=5e-2), (out, ref)

    print("KERNEL_OK")
</pallas_src>

<mosaic_0001>
module attributes {stable_mosaic.version = 11 : i64} {
  func.func @_linear_kernel(%arg0: i32, %arg1: memref<200x256xbf16, #tpu.memory_space<vmem>>, %arg2: memref<256x32xbf16, #tpu.memory_space<vmem>>, %arg3: memref<1x32xf32, #tpu.memory_space<vmem>>, %arg4: memref<200x32xbf16, #tpu.memory_space<vmem>>) attributes {dimension_semantics = [#tpu.dimension_semantics<parallel>], iteration_bounds = array<i64: 1>, scalar_prefetch = 0 : i64, scratch_operands = 0 : i64, tpu.core_type = #tpu.core_type<tc>, window_params = [{transform_indices = @transform_0, window_bounds = array<i64: 200, 256>}, {pipeline_mode = #tpu.pipeline_mode<synchronous>, transform_indices = @transform_1, window_bounds = array<i64: 256, 32>}, {pipeline_mode = #tpu.pipeline_mode<synchronous>, transform_indices = @transform_2, window_bounds = array<i64: 1, 32>}, {transform_indices = @transform_3, window_bounds = array<i64: 200, 32>}]} {
    %c0 = arith.constant 0 : index
    %c0_0 = arith.constant 0 : index
    %0 = vector.load %arg1[%c0, %c0_0] : memref<200x256xbf16, #tpu.memory_space<vmem>>, vector<200x256xbf16>
    %c0_1 = arith.constant 0 : index
    %c0_2 = arith.constant 0 : index
    %1 = vector.load %arg2[%c0_1, %c0_2] : memref<256x32xbf16, #tpu.memory_space<vmem>>, vector<256x32xbf16>
    %cst = arith.constant dense<0.000000e+00> : vector<200x32xf32>
    %2 = tpu.matmul %0, %1, %cst {dimension_numbers = #tpu.dot_dimension_numbers<[1], [0], [0], [1], [0, 0, 1, 1], [], []>} : vector<200x256xbf16>, vector<256x32xbf16>, vector<200x32xf32> -> vector<200x32xf32>
    %c0_3 = arith.constant 0 : index
    %c0_4 = arith.constant 0 : index
    %3 = vector.load %arg3[%c0_3, %c0_4] : memref<1x32xf32, #tpu.memory_space<vmem>>, vector<1x32xf32>
    %4 = vector.broadcast %3 : vector<1x32xf32> to vector<200x32xf32>
    %5 = arith.addf %2, %4 : vector<200x32xf32>
    %cst_5 = arith.constant 0.000000e+00 : f32
    %6 = vector.broadcast %cst_5 : f32 to vector<200x32xf32>
    %7 = arith.maximumf %5, %6 : vector<200x32xf32>
    %8 = arith.truncf %7 : vector<200x32xf32> to vector<200x32xbf16>
    %c0_6 = arith.constant 0 : index
    %c0_7 = arith.constant 0 : index
    %9 = vector.load %arg4[%c0_6, %c0_7] : memref<200x32xbf16, #tpu.memory_space<vmem>>, vector<200x32xbf16>
    tpu.vector_store %arg4[%c0_6, %c0_7], %8 {strides = array<i32>} : memref<200x32xbf16, #tpu.memory_space<vmem>>, vector<200x32xbf16>,
    return
  }
  func.func @transform_0(%arg0: i32) -> (i32, i32) {
    %c0_i32 = arith.constant 0 : i32
    %c0_i32_0 = arith.constant 0 : i32
    return %arg0, %c0_i32 : i32, i32
  }
  func.func @transform_1(%arg0: i32) -> (i32, i32) {
    %c0_i32 = arith.constant 0 : i32
    %c0_i32_0 = arith.constant 0 : i32
    %c0_i32_1 = arith.constant 0 : i32
    return %c0_i32, %c0_i32_0 : i32, i32
  }
  func.func @transform_2(%arg0: i32) -> (i32, i32) {
    %c0_i32 = arith.constant 0 : i32
    %c0_i32_0 = arith.constant 0 : i32
    %c0_i32_1 = arith.constant 0 : i32
    return %c0_i32, %c0_i32_0 : i32, i32
  }
  func.func @transform_3(%arg0: i32) -> (i32, i32) {
    %c0_i32 = arith.constant 0 : i32
    %c0_i32_0 = arith.constant 0 : i32
    return %arg0, %c0_i32 : i32, i32
  }
}

module attributes {stable_mosaic.version = 11 : i64} {
  func.func @_linear_kernel(%arg0: i32, %arg1: memref<32x512xbf16, #tpu.memory_space<vmem>>, %arg2: memref<512x64xbf16, #tpu.memory_space<vmem>>, %arg3: memref<1x64xf32, #tpu.memory_space<vmem>>, %arg4: memref<32x64xbf16, #tpu.memory_space<vmem>>) attributes {dimension_semantics = [#tpu.dimension_semantics<parallel>], iteration_bounds = array<i64: 1>, scalar_prefetch = 0 : i64, scratch_operands = 0 : i64, tpu.core_type = #tpu.core_type<tc>, window_params = [{transform_indices = @transform_0, window_bounds = array<i64: 32, 512>}, {pipeline_mode = #tpu.pipeline_mode<synchronous>, transform_indices = @transform_1, window_bounds = array<i64: 512, 64>}, {pipeline_mode = #tpu.pipeline_mode<synchronous>, transform_indices = @transform_2, window_bounds = array<i64: 1, 64>}, {transform_indices = @transform_3, window_bounds = array<i64: 32, 64>}]} {
    %c0 = arith.constant 0 : index
    %c0_0 = arith.constant 0 : index
    %0 = vector.load %arg1[%c0, %c0_0] : memref<32x512xbf16, #tpu.memory_space<vmem>>, vector<32x512xbf16>
    %c0_1 = arith.constant 0 : index
    %c0_2 = arith.constant 0 : index
    %1 = vector.load %arg2[%c0_1, %c0_2] : memref<512x64xbf16, #tpu.memory_space<vmem>>, vector<512x64xbf16>
    %cst = arith.constant dense<0.000000e+00> : vector<32x64xf32>
    %2 = tpu.matmul %0, %1, %cst {dimension_numbers = #tpu.dot_dimension_numbers<[1], [0], [0], [1], [0, 0, 1, 1], [], []>} : vector<32x512xbf16>, vector<512x64xbf16>, vector<32x64xf32> -> vector<32x64xf32>
    %c0_3 = arith.constant 0 : index
    %c0_4 = arith.constant 0 : index
    %3 = vector.load %arg3[%c0_3, %c0_4] : memref<1x64xf32, #tpu.memory_space<vmem>>, vector<1x64xf32>
    %4 = vector.broadcast %3 : vector<1x64xf32> to vector<32x64xf32>
    %5 = arith.addf %2, %4 : vector<32x64xf32>
    %cst_5 = arith.constant 0.000000e+00 : f32
    %6 = vector.broadcast %cst_5 : f32 to vector<32x64xf32>
    %7 = arith.maximumf %5, %6 : vector<32x64xf32>
    %8 = arith.truncf %7 : vector<32x64xf32> to vector<32x64xbf16>
    %c0_6 = arith.constant 0 : index
    %c0_7 = arith.constant 0 : index
    %9 = vector.load %arg4[%c0_6, %c0_7] : memref<32x64xbf16, #tpu.memory_space<vmem>>, vector<32x64xbf16>
    tpu.vector_store %arg4[%c0_6, %c0_7], %8 {strides = array<i32>} : memref<32x64xbf16, #tpu.memory_space<vmem>>, vector<32x64xbf16>,
    return
  }
  func.func @transform_0(%arg0: i32) -> (i32, i32) {
    %c0_i32 = arith.constant 0 : i32
    %c0_i32_0 = arith.constant 0 : i32
    return %arg0, %c0_i32 : i32, i32
  }
  func.func @transform_1(%arg0: i32) -> (i32, i32) {
    %c0_i32 = arith.constant 0 : i32
    %c0_i32_0 = arith.constant 0 : i32
    %c0_i32_1 = arith.constant 0 : i32
    return %c0_i32, %c0_i32_0 : i32, i32
  }
  func.func @transform_2(%arg0: i32) -> (i32, i32) {
    %c0_i32 = arith.constant 0 : i32
    %c0_i32_0 = arith.constant 0 : i32
    %c0_i32_1 = arith.constant 0 : i32
    return %c0_i32, %c0_i32_0 : i32, i32
  }
  func.func @transform_3(%arg0: i32) -> (i32, i32) {
    %c0_i32 = arith.constant 0 : i32
    %c0_i32_0 = arith.constant 0 : i32
    return %arg0, %c0_i32 : i32, i32
  }
}

module attributes {stable_mosaic.version = 11 : i64} {
  func.func @_linear_kernel(%arg0: i32, %arg1: memref<8x576xbf16, #tpu.memory_space<vmem>>, %arg2: memref<576x64xbf16, #tpu.memory_space<vmem>>, %arg3: memref<1x64xf32, #tpu.memory_space<vmem>>, %arg4: memref<8x64xbf16, #tpu.memory_space<vmem>>) attributes {dimension_semantics = [#tpu.dimension_semantics<parallel>], iteration_bounds = array<i64: 1>, scalar_prefetch = 0 : i64, scratch_operands = 0 : i64, tpu.core_type = #tpu.core_type<tc>, window_params = [{transform_indices = @transform_0, window_bounds = array<i64: 8, 576>}, {pipeline_mode = #tpu.pipeline_mode<synchronous>, transform_indices = @transform_1, window_bounds = array<i64: 576, 64>}, {pipeline_mode = #tpu.pipeline_mode<synchronous>, transform_indices = @transform_2, window_bounds = array<i64: 1, 64>}, {transform_indices = @transform_3, window_bounds = array<i64: 8, 64>}]} {
    %c0 = arith.constant 0 : index
    %c0_0 = arith.constant 0 : index
    %0 = vector.load %arg1[%c0, %c0_0] : memref<8x576xbf16, #tpu.memory_space<vmem>>, vector<8x576xbf16>
    %c0_1 = arith.constant 0 : index
    %c0_2 = arith.constant 0 : index
    %1 = vector.load %arg2[%c0_1, %c0_2] : memref<576x64xbf16, #tpu.memory_space<vmem>>, vector<576x64xbf16>
    %cst = arith.constant dense<0.000000e+00> : vector<8x64xf32>
    %2 = tpu.matmul %0, %1, %cst {dimension_numbers = #tpu.dot_dimension_numbers<[1], [0], [0], [1], [0, 0, 1, 1], [], []>} : vector<8x576xbf16>, vector<576x64xbf16>, vector<8x64xf32> -> vector<8x64xf32>
    %c0_3 = arith.constant 0 : index
    %c0_4 = arith.constant 0 : index
    %3 = vector.load %arg3[%c0_3, %c0_4] : memref<1x64xf32, #tpu.memory_space<vmem>>, vector<1x64xf32>
    %4 = vector.broadcast %3 : vector<1x64xf32> to vector<8x64xf32>
    %5 = arith.addf %2, %4 : vector<8x64xf32>
    %cst_5 = arith.constant 0.000000e+00 : f32
    %6 = vector.broadcast %cst_5 : f32 to vector<8x64xf32>
    %7 = arith.maximumf %5, %6 : vector<8x64xf32>
    %8 = arith.truncf %7 : vector<8x64xf32> to vector<8x64xbf16>
    %c0_6 = arith.constant 0 : index
    %c0_7 = arith.constant 0 : index
    %9 = vector.load %arg4[%c0_6, %c0_7] : memref<8x64xbf16, #tpu.memory_space<vmem>>, vector<8x64xbf16>
    tpu.vector_store %arg4[%c0_6, %c0_7], %8 {strides = array<i32>} : memref<8x64xbf16, #tpu.memory_space<vmem>>, vector<8x64xbf16>,
    return
  }
  func.func @transform_0(%arg0: i32) -> (i32, i32) {
    %c0_i32 = arith.constant 0 : i32
    %c0_i32_0 = arith.constant 0 : i32
    return %arg0, %c0_i32 : i32, i32
  }
  func.func @transform_1(%arg0: i32) -> (i32, i32) {
    %c0_i32 = arith.constant 0 : i32
    %c0_i32_0 = arith.constant 0 : i32
    %c0_i32_1 = arith.constant 0 : i32
    return %c0_i32, %c0_i32_0 : i32, i32
  }
  func.func @transform_2(%arg0: i32) -> (i32, i32) {
    %c0_i32 = arith.constant 0 : i32
    %c0_i32_0 = arith.constant 0 : i32
    %c0_i32_1 = arith.constant 0 : i32
    return %c0_i32, %c0_i32_0 : i32, i32
  }
  func.func @transform_3(%arg0: i32) -> (i32, i32) {
    %c0_i32 = arith.constant 0 : i32
    %c0_i32_0 = arith.constant 0 : i32
    return %arg0, %c0_i32 : i32, i32
  }
}

module attributes {stable_mosaic.version = 11 : i64} {
  func.func @_head_kernel(%arg0: memref<2x256xbf16, #tpu.memory_space<vmem>>, %arg1: memref<256x1024xbf16, #tpu.memory_space<vmem>>, %arg2: memref<1x1024xf32, #tpu.memory_space<vmem>>, %arg3: memref<1024x7xbf16, #tpu.memory_space<vmem>>, %arg4: memref<1x7xf32, #tpu.memory_space<vmem>>, %arg5: memref<2x6xf32, #tpu.memory_space<vmem>>) attributes {dimension_semantics = [], scalar_prefetch = 0 : i64, scratch_operands = 0 : i64, tpu.core_type = #tpu.core_type<tc>} {
    %c0 = arith.constant 0 : index
    %c0_0 = arith.constant 0 : index
    %0 = vector.load %arg0[%c0, %c0_0] : memref<2x256xbf16, #tpu.memory_space<vmem>>, vector<2x256xbf16>
    %c0_1 = arith.constant 0 : index
    %c0_2 = arith.constant 0 : index
    %1 = vector.load %arg1[%c0_1, %c0_2] : memref<256x1024xbf16, #tpu.memory_space<vmem>>, vector<256x1024xbf16>
    %cst = arith.constant dense<0.000000e+00> : vector<2x1024xf32>
    %2 = tpu.matmul %0, %1, %cst {dimension_numbers = #tpu.dot_dimension_numbers<[1], [0], [0], [1], [0, 0, 1, 1], [], []>} : vector<2x256xbf16>, vector<256x1024xbf16>, vector<2x1024xf32> -> vector<2x1024xf32>
    %c0_3 = arith.constant 0 : index
    %c0_4 = arith.constant 0 : index
    %3 = vector.load %arg2[%c0_3, %c0_4] : memref<1x1024xf32, #tpu.memory_space<vmem>>, vector<1x1024xf32>
    %4 = vector.broadcast %3 : vector<1x1024xf32> to vector<2x1024xf32>
    %5 = arith.addf %2, %4 : vector<2x1024xf32>
    %cst_5 = arith.constant 0.000000e+00 : f32
    %6 = vector.broadcast %cst_5 : f32 to vector<2x1024xf32>
    %7 = arith.maximumf %5, %6 : vector<2x1024xf32>
    %8 = arith.truncf %7 : vector<2x1024xf32> to vector<2x1024xbf16>
    %c0_6 = arith.constant 0 : index
    %c0_7 = arith.constant 0 : index
    %9 = vector.load %arg3[%c0_6, %c0_7] : memref<1024x7xbf16, #tpu.memory_space<vmem>>, vector<1024x7xbf16>
    %cst_8 = arith.constant dense<0.000000e+00> : vector<2x7xf32>
    %10 = tpu.matmul %8, %9, %cst_8 {dimension_numbers = #tpu.dot_dimension_numbers<[1], [0], [0], [1], [0, 0, 1, 1], [], []>} : vector<2x1024xbf16>, vector<1024x7xbf16>, vector<2x7xf32> -> vector<2x7xf32>
    %c0_9 = arith.constant 0 : index
    %c0_10 = arith.constant 0 : index
    %11 = vector.load %arg4[%c0_9, %c0_10] : memref<1x7xf32, #tpu.memory_space<vmem>>, vector<1x7xf32>
    %12 = vector.broadcast %11 : vector<1x7xf32> to vector<2x7xf32>
    %13 = arith.addf %10, %12 : vector<2x7xf32>
    %14 = vector.extract_strided_slice %13 {offsets = [0, 0], sizes = [2, 6], strides = [1, 1]} : vector<2x7xf32> to vector<2x6xf32>
    %15 = vector.extract_strided_slice %13 {offsets = [0, 6], sizes = [2, 1], strides = [1, 1]} : vector<2x7xf32> to vector<2x1xf32>
    %16 = vector.broadcast %15 : vector<2x1xf32> to vector<2x6xf32>
    %17 = arith.addf %16, %14 : vector<2x6xf32>
    %18 = vector.shape_cast %14 : vector<2x6xf32> to vector<1x2x6xf32>
    %cst_11 = arith.constant dense<0.000000e+00> : vector<1xf32>
    %19 = vector.multi_reduction <add>, %18, %cst_11 [1, 2] : vector<1x2x6xf32> to vector<1xf32>
    %20 = vector.shape_cast %19 : vector<1xf32> to vector<1x1x1xf32>
    %21 = vector.extract %20[0, 0, 0] : f32 from vector<1x1x1xf32>
    %cst_12 = arith.constant 1.200000e+01 : f32
    %22 = arith.divf %21, %cst_12 : f32
    %23 = vector.broadcast %22 : f32 to vector<2x6xf32>
    %24 = arith.subf %17, %23 : vector<2x6xf32>
    %c0_13 = arith.constant 0 : index
    %c0_14 = arith.constant 0 : index
    %25 = vector.load %arg5[%c0_13, %c0_14] : memref<2x6xf32, #tpu.memory_space<vmem>>, vector<2x6xf32>
    tpu.vector_store %arg5[%c0_13, %c0_14], %24 {strides = array<i32>} : memref<2x6xf32, #tpu.memory_space<vmem>>, vector<2x6xf32>,
    return
  }
}

</mosaic_0001>

<bundles_post_ra>
// kernel: dueling_dqn_forward.4
= control target key start
LH: loop header
LB: loop body
LE: loop exit
PB: predicated region body
PF: predicated region fallthrough
CT: control target
= control target key end

     0   :  { %vm564_vm0 = vcmask 257024   ;;  %s1124_s1 = inlined_call_operand.vmem [shape: bf16[256,32], index: 1, kind: input, shape index: {}]   ;;  %s1125_s0 = inlined_call_operand.vmem [shape: bf16[200,256], index: 0, kind: input, shape index: {}]   ;;  %s1126_s2 = inlined_call_operand.vmem [shape: f32[1,32], index: 2, kind: input, shape index: {}]   ;;  %s1127_s3 = inlined_call_operand.vmem [shape: bf16[200,32], index: 3, kind: output, shape index: {}]  }
   0x1   :  { %v797_v0 = vld [vmem:[%s1124_s1 + $0x78] sm:$0xff]   ;;  %v799_v2 = vld [vmem:[%s1124_s1 + $0x70] sm:$0xff]   ;;  %v801_v4 = vld [vmem:[%s1124_s1 + $0x68] sm:$0xff]  }
   0x2   :  { %v798_v1 = vld [vmem:[%s1124_s1 + $0x38] sm:$0xff]   ;;  %687 = vmatprep.subr.bf16.mxu0 %v797_v0  ;;  %781 = vmatprep.subr.bf16.mxu1 %v797_v0  ;;  %v800_v3 = vld [vmem:[%s1124_s1 + $0x30] sm:$0xff]   ;;  %v802_v5 = vld [vmem:[%s1124_s1 + $0x28] sm:$0xff]  }
   0x3   :  { %688 = vmatpush3.bf16.msra.mxu0 %v798_v1  ;;  %789 = vmatpush3.bf16.msra.mxu1 %v798_v1  ;;  %v803_v6 = vld [vmem:[%s1124_s1 + $0x60] sm:$0xff]   ;;  %v805_v8 = vld [vmem:[%s1124_s1 + $0x58] sm:$0xff]   ;;  %v807_v10 = vld [vmem:[%s1124_s1 + $0x50] sm:$0xff]  }
   0x4   :  { %689 = vmatprep.subr.bf16.mxu0 %v799_v2  ;;  %782 = vmatprep.subr.bf16.mxu1 %v799_v2  ;;  %v804_v7 = vld [vmem:[%s1124_s1 + $0x20] sm:$0xff]   ;;  %v806_v9 = vld [vmem:[%s1124_s1 + $0x18] sm:$0xff]   ;;  %v808_v13 = vld [vmem:[%s1124_s1 + $0x10] sm:$0xff]  }
   0x5   :  { %v815_v11 = vld [vmem:[%s1125_s0 + $0x4] ss:$8 sps:$4 sm:$0xff]   ;;  %v818_v12 = vld [vmem:[%s1125_s0 + $0x74] ss:$8 sps:$4 sm:$0xff]   ;;  %v813_v18 = vld [vmem:[%s1125_s0] ss:$8 sps:$4 sm:$0xff]  }
   0x6   :  { %v809_v14 = vld [vmem:[%s1124_s1 + $0x48] sm:$0xff]   ;;  %334 = vmatprep.mubr.bf16.mxu0 %v815_v11  ;;  %390 = vmatprep.mubr.bf16.mxu1 %v818_v12  ;;  %v811_v16 = vld [vmem:[%s1124_s1 + $0x40] sm:$0xff]   ;;  %v816_v19 = vld [vmem:[%s1125_s0 + $0x70] ss:$8 sps:$4 sm:$0xff]  }
   0x7   :  { %690 = vmatpush3.bf16.msra.mxu0 %v800_v3  ;;  %790 = vmatpush3.bf16.msra.mxu1 %v800_v3  ;;  %v810_v15 = vld [vmem:[%s1124_s1 + $0x8] sm:$0xff]   ;;  %v812_v17 = vld [vmem:[%s1124_s1] sm:$0xff]   ;;  %v819_v20 = vld [vmem:[%s1125_s0 + $0x14] ss:$8 sps:$4 sm:$0xff]  }
   0x8   :  { %691 = vmatprep.subr.bf16.mxu0 %v801_v4  ;;  %783 = vmatprep.subr.bf16.mxu1 %v801_v4  ;;  %v822_v21 = vld [vmem:[%s1125_s0 + $0x84] ss:$8 sps:$4 sm:$0xff]   ;;  %v821_v22 = vld [vmem:[%s1125_s0 + $0x10] ss:$8 sps:$4 sm:$0xff]   ;;  %v824_v23 = vld [vmem:[%s1125_s0 + $0x80] ss:$8 sps:$4 sm:$0xff]  }
   0x9   :  { %v825_v24 = vld [vmem:[%s1125_s0 + $0x24] ss:$8 sps:$4 sm:$0xff]   ;;  %v828_v25 = vld [vmem:[%s1125_s0 + $0x94] ss:$8 sps:$4 sm:$0xff]   ;;  %v827_v26 = vld [vmem:[%s1125_s0 + $0x20] ss:$8 sps:$4 sm:$0xff]  }
   0xa   :  { %v830_v27 = vld [vmem:[%s1125_s0 + $0x90] ss:$8 sps:$4 sm:$0xff]   ;;  %v831_v28 = vld [vmem:[%s1125_s0 + $0x34] ss:$8 sps:$4 sm:$0xff]   ;;  %v834_v29 = vld [vmem:[%s1125_s0 + $0xa4] ss:$8 sps:$4 sm:$0xff]  }
   0xb   :  { %692 = vmatpush3.bf16.msra.mxu0 %v802_v5  ;;  %791 = vmatpush3.bf16.msra.mxu1 %v802_v5  ;;  %v833_v30 = vld [vmem:[%s1125_s0 + $0x30] ss:$8 sps:$4 sm:$0xff]   ;;  %v836_v31 = vld [vmem:[%s1125_s0 + $0xa0] ss:$8 sps:$4 sm:$0xff]   ;;  %v837_v32 = vld [vmem:[%s1125_s0 + $0x44] ss:$8 sps:$4 sm:$0xff]  }
   0xc   :  { %693 = vmatprep.subr.bf16.mxu0 %v803_v6  ;;  %784 = vmatprep.subr.bf16.mxu1 %v803_v6  ;;  %v840_v33 = vld [vmem:[%s1125_s0 + $0xb4] ss:$8 sps:$4 sm:$0xff]   ;;  %v39_v34 = vld [vmem:[%s1125_s0 + $0xc0] sm:$0xff]  ;;  %v842_v36 = vld [vmem:[%s1125_s0 + $0xb0] ss:$8 sps:$4 sm:$0xff]  }
   0xd   :  { %v839_v35 = vld [vmem:[%s1125_s0 + $0x40] ss:$8 sps:$4 sm:$0xff]   ;;  %v843_v37 = vld [vmem:[%s1125_s0 + $0x54] ss:$8 sps:$4 sm:$0xff]   ;;  %v620_v38 = vcombine.high %v39_v34, %v39_v34  ;;  %v845_v39 = vld [vmem:[%s1125_s0 + $0x50] ss:$8 sps:$4 sm:$0xff]   ;;  %v619_v40 = vcombine.low %v39_v34, %v39_v34 }
   0xe   :  { %v848_v41 = vld [vmem:[%s1125_s0 + $0x64] ss:$8 sps:$4 sm:$0xff]   ;;  %v850_v42 = vld [vmem:[%s1125_s0 + $0x60] ss:$8 sps:$4 sm:$0xff]  }
   0xf   :  { %694 = vmatpush3.bf16.msra.mxu0 %v804_v7  ;;  %792 = vmatpush3.bf16.msra.mxu1 %v804_v7  ;;  %v997_v45 = vld [vmem:[%s1126_s2] ss:$0 sm:$0xff] }
  0x10   :  { %695 = vmatprep.subr.bf16.mxu0 %v805_v8  ;;  %785 = vmatprep.subr.bf16.mxu1 %v805_v8 }
  0x13   :  { %696 = vmatpush3.bf16.msra.mxu0 %v806_v9  ;;  %793 = vmatpush3.bf16.msra.mxu1 %v806_v9 }
  0x14   :  { %697 = vmatprep.subr.bf16.mxu0 %v807_v10  ;;  %786 = vmatprep.subr.bf16.mxu1 %v807_v10 }
  0x17   :  { %698 = vmatpush3.bf16.msra.mxu0 %v808_v13  ;;  %794 = vmatpush3.bf16.msra.mxu1 %v808_v13 }
  0x18   :  { %699 = vmatprep.subr.bf16.mxu0 %v809_v14  ;;  %787 = vmatprep.subr.bf16.mxu1 %v809_v14 }
  0x1b   :  { %700 = vmatpush3.bf16.msra.mxu0 %v810_v15  ;;  %795 = vmatpush3.bf16.msra.mxu1 %v810_v15 }
  0x1c   :  { %701 = vmatprep.subr.bf16.mxu0 %v811_v16  ;;  %788 = vmatprep.subr.bf16.mxu1 %v811_v16 }
  0x1f   :  { %702 = vmatpush3.bf16.msra.mxu0 %v812_v17  ;;  %796 = vmatpush3.bf16.msra.mxu1 %v812_v17 }
  0x22   :  { %335 = vmatmul.mubr.bf16.vlgmr.msra.gmra.mxu0 %v813_v18  ;;  %391 = vmatmul.mubr.bf16.vlgmr.msra.gmra.mxu1 %v816_v19 }
  0x23   :  { %342 = vmatprep.mubr.bf16.mxu0 %v819_v20  ;;  %398 = vmatprep.mubr.bf16.mxu1 %v822_v21 }
  0x2a   :  { %343 = vmatmul.mubr.bf16.gmra.mxu0 %v821_v22  ;;  %399 = vmatmul.mubr.bf16.gmra.mxu1 %v824_v23 }
  0x2b   :  { %350 = vmatprep.mubr.bf16.mxu0 %v825_v24  ;;  %406 = vmatprep.mubr.bf16.mxu1 %v828_v25 }
  0x32   :  { %351 = vmatmul.mubr.bf16.gmra.mxu0 %v827_v26  ;;  %407 = vmatmul.mubr.bf16.gmra.mxu1 %v830_v27 }
  0x33   :  { %358 = vmatprep.mubr.bf16.mxu0 %v831_v28  ;;  %414 = vmatprep.mubr.bf16.mxu1 %v834_v29 }
  0x3a   :  { %359 = vmatmul.mubr.bf16.gmra.mxu0 %v833_v30  ;;  %415 = vmatmul.mubr.bf16.gmra.mxu1 %v836_v31 }
  0x3b   :  { %366 = vmatprep.mubr.bf16.mxu0 %v837_v32  ;;  %422 = vmatprep.mubr.bf16.mxu1 %v840_v33 }
  0x42   :  { %367 = vmatmul.mubr.bf16.gmra.mxu0 %v839_v35  ;;  %423 = vmatmul.mubr.bf16.gmra.mxu1 %v842_v36 }
  0x43   :  { %374 = vmatprep.mubr.bf16.mxu0 %v843_v37  ;;  %430 = vmatprep.mubr.bf16.mxu1 %v620_v38 }
  0x4a   :  { %375 = vmatmul.mubr.bf16.gmra.mxu0 %v845_v39  ;;  %431 = vmatmul.mubr.bf16.gmra.mxu1 %v619_v40 }
  0x4b   :  { %382 = vmatprep.mubr.bf16.mxu0 %v848_v41 }
  0x52   :  { %383 = vmatmul.mubr.bf16.gmra.mxu0 %v850_v42 }
  0xe2   :  { %v703_v43 = vpop.f32.mrf.mxu0  ;;  %v745_v44 = vpop.f32.mrf.mxu1 }
  0xe4   :  { %v704_v46 = vpop.f32.mrf.mxu0  ;;  %v746_v47 = vpop.f32.mrf.mxu1 }
  0xe5   :  { %v705_v48 = vadd.f32 %v704_v46, %v703_v43  ;;  %v747_v49 = vadd.f32 %v746_v47, %v745_v44 }
  0xe6   :  { %v706_v50 = vpop.f32.mrf.mxu0  ;;  %v748_v51 = vpop.f32.mrf.mxu1 }
  0xe7   :  { %v337_v52 = vadd.f32 %v705_v48, %v997_v45  ;;  %v393_v53 = vadd.f32 %v747_v49, %v997_v45 }
  0xe8   :  { %v707_v54 = vpop.f32.mrf.mxu0  ;;  %v749_v55 = vpop.f32.mrf.mxu1 }
  0xe9   :  { %v438_v56 = vmax.f32 %v337_v52, 0.0  ;;  %v708_v57 = vadd.f32 %v707_v54, %v706_v50  ;;  %v452_v58 = vmax.f32 %v393_v53, 0.0  ;;  %v750_v59 = vadd.f32 %v749_v55, %v748_v51 }
  0xea   :  { %v709_v60 = vpop.f32.mrf.mxu0  ;;  %v751_v61 = vpop.f32.mrf.mxu1 }
  0xeb   :  { %v662_v62 = vpack.c.bf16 %v438_v56, %v438_v56  ;;  %v340_v63 = vadd.f32 %v708_v57, %v997_v45  ;;  %v676_v0 = vpack.c.bf16 %v452_v58, %v452_v58  ;;  %v396_v1 = vadd.f32 %v750_v59, %v997_v45 }
  0xec   :  { %v710_v2 = vpop.f32.mrf.mxu0  ;;  %v752_v3 = vpop.f32.mrf.mxu1 }
  0xed   :  { %565 = vst.msk [vmem:[%s1127_s3] sm:$0xf] %vm564_vm0, %v662_v62  ;;  %v439_v4 = vmax.f32 %v340_v63, 0.0  ;;  %579 = vst.msk [vmem:[%s1127_s3 + $0x38] sm:$0xf] %vm564_vm0, %v676_v0  ;;  %v711_v5 = vadd.f32 %v710_v2, %v709_v60  ;;  %v453_v6 = vmax.f32 %v396_v1, 0.0  ;;  %v753_v7 = vadd.f32 %v752_v3, %v751_v61 }
  0xee   :  { %v712_v8 = vpop.f32.mrf.mxu0  ;;  %v754_v9 = vpop.f32.mrf.mxu1 }
  0xef   :  { %v663_v10 = vpack.c.bf16 %v439_v4, %v439_v4  ;;  %v345_v11 = vadd.f32 %v711_v5, %v997_v45  ;;  %v677_v12 = vpack.c.bf16 %v453_v6, %v453_v6  ;;  %v401_v13 = vadd.f32 %v753_v7, %v997_v45 }
  0xf0   :  { %v713_v14 = vpop.f32.mrf.mxu0  ;;  %v755_v15 = vpop.f32.mrf.mxu1 }
  0xf1   :  { %566 = vst.msk [vmem:[%s1127_s3 + $0x4] sm:$0xf] %vm564_vm0, %v663_v10  ;;  %v440_v16 = vmax.f32 %v345_v11, 0.0  ;;  %580 = vst.msk [vmem:[%s1127_s3 + $0x3c] sm:$0xf] %vm564_vm0, %v677_v12  ;;  %v714_v17 = vadd.f32 %v713_v14, %v712_v8  ;;  %v454_v18 = vmax.f32 %v401_v13, 0.0  ;;  %v756_v19 = vadd.f32 %v755_v15, %v754_v9 }
  0xf2   :  { %v715_v20 = vpop.f32.mrf.mxu0  ;;  %v757_v21 = vpop.f32.mrf.mxu1 }
  0xf3   :  { %v664_v22 = vpack.c.bf16 %v440_v16, %v440_v16  ;;  %v348_v23 = vadd.f32 %v714_v17, %v997_v45  ;;  %v678_v24 = vpack.c.bf16 %v454_v18, %v454_v18  ;;  %v404_v25 = vadd.f32 %v756_v19, %v997_v45 }
  0xf4   :  { %v716_v26 = vpop.f32.mrf.mxu0  ;;  %v758_v27 = vpop.f32.mrf.mxu1 }
  0xf5   :  { %567 = vst.msk [vmem:[%s1127_s3 + $0x8] sm:$0xf] %vm564_vm0, %v664_v22  ;;  %v441_v28 = vmax.f32 %v348_v23, 0.0  ;;  %581 = vst.msk [vmem:[%s1127_s3 + $0x40] sm:$0xf] %vm564_vm0, %v678_v24  ;;  %v717_v29 = vadd.f32 %v716_v26, %v715_v20  ;;  %v455_v30 = vmax.f32 %v404_v25, 0.0  ;;  %v759_v31 = vadd.f32 %v758_v27, %v757_v21 }
  0xf6   :  { %v718_v32 = vpop.f32.mrf.mxu0  ;;  %v760_v33 = vpop.f32.mrf.mxu1 }
  0xf7   :  { %v665_v34 = vpack.c.bf16 %v441_v28, %v441_v28  ;;  %v353_v35 = vadd.f32 %v717_v29, %v997_v45  ;;  %v679_v36 = vpack.c.bf16 %v455_v30, %v455_v30  ;;  %v409_v37 = vadd.f32 %v759_v31, %v997_v45 }
  0xf8   :  { %v719_v38 = vpop.f32.mrf.mxu0  ;;  %v761_v39 = vpop.f32.mrf.mxu1 }
  0xf9   :  { %568 = vst.msk [vmem:[%s1127_s3 + $0xc] sm:$0xf] %vm564_vm0, %v665_v34  ;;  %v442_v40 = vmax.f32 %v353_v35, 0.0  ;;  %582 = vst.msk [vmem:[%s1127_s3 + $0x44] sm:$0xf] %vm564_vm0, %v679_v36  ;;  %v720_v41 = vadd.f32 %v719_v38, %v718_v32  ;;  %v456_v42 = vmax.f32 %v409_v37, 0.0  ;;  %v762_v43 = vadd.f32 %v761_v39, %v760_v33 }
  0xfa   :  { %v721_v44 = vpop.f32.mrf.mxu0  ;;  %v763_v46 = vpop.f32.mrf.mxu1 }
  0xfb   :  { %v666_v47 = vpack.c.bf16 %v442_v40, %v442_v40  ;;  %v356_v48 = vadd.f32 %v720_v41, %v997_v45  ;;  %v680_v49 = vpack.c.bf16 %v456_v42, %v456_v42  ;;  %v412_v50 = vadd.f32 %v762_v43, %v997_v45 }
  0xfc   :  { %v722_v51 = vpop.f32.mrf.mxu0  ;;  %v764_v52 = vpop.f32.mrf.mxu1 }
  0xfd   :  { %569 = vst.msk [vmem:[%s1127_s3 + $0x10] sm:$0xf] %vm564_vm0, %v666_v47  ;;  %v443_v53 = vmax.f32 %v356_v48, 0.0  ;;  %583 = vst.msk [vmem:[%s1127_s3 + $0x48] sm:$0xf] %vm564_vm0, %v680_v49  ;;  %v723_v54 = vadd.f32 %v722_v51, %v721_v44  ;;  %v457_v55 = vmax.f32 %v412_v50, 0.0  ;;  %v765_v56 = vadd.f32 %v764_v52, %v763_v46 }
  0xfe   :  { %v724_v57 = vpop.f32.mrf.mxu0  ;;  %v766_v58 = vpop.f32.mrf.mxu1 }
  0xff   :  { %v667_v59 = vpack.c.bf16 %v443_v53, %v443_v53  ;;  %v361_v60 = vadd.f32 %v723_v54, %v997_v45  ;;  %v681_v61 = vpack.c.bf16 %v457_v55, %v457_v55  ;;  %v417_v62 = vadd.f32 %v765_v56, %v997_v45 }
 0x100   :  { %v725_v63 = vpop.f32.mrf.mxu0  ;;  %v767_v0 = vpop.f32.mrf.mxu1 }
 0x101   :  { %570 = vst.msk [vmem:[%s1127_s3 + $0x14] sm:$0xf] %vm564_vm0, %v667_v59  ;;  %v444_v1 = vmax.f32 %v361_v60, 0.0  ;;  %584 = vst.msk [vmem:[%s1127_s3 + $0x4c] sm:$0xf] %vm564_vm0, %v681_v61  ;;  %v726_v2 = vadd.f32 %v725_v63, %v724_v57  ;;  %v458_v3 = vmax.f32 %v417_v62, 0.0  ;;  %v768_v4 = vadd.f32 %v767_v0, %v766_v58 }
 0x102   :  { %v727_v5 = vpop.f32.mrf.mxu0  ;;  %v769_v6 = vpop.f32.mrf.mxu1 }
 0x103   :  { %v668_v7 = vpack.c.bf16 %v444_v1, %v444_v1  ;;  %v364_v8 = vadd.f32 %v726_v2, %v997_v45  ;;  %v682_v9 = vpack.c.bf16 %v458_v3, %v458_v3  ;;  %v420_v10 = vadd.f32 %v768_v4, %v997_v45 }
 0x104   :  { %v728_v11 = vpop.f32.mrf.mxu0  ;;  %v770_v12 = vpop.f32.mrf.mxu1 }
 0x105   :  { %571 = vst.msk [vmem:[%s1127_s3 + $0x18] sm:$0xf] %vm564_vm0, %v668_v7  ;;  %v445_v13 = vmax.f32 %v364_v8, 0.0  ;;  %585 = vst.msk [vmem:[%s1127_s3 + $0x50] sm:$0xf] %vm564_vm0, %v682_v9  ;;  %v729_v14 = vadd.f32 %v728_v11, %v727_v5  ;;  %v459_v15 = vmax.f32 %v420_v10, 0.0  ;;  %v771_v16 = vadd.f32 %v770_v12, %v769_v6 }
 0x106   :  { %v730_v17 = vpop.f32.mrf.mxu0  ;;  %v772_v18 = vpop.f32.mrf.mxu1 }
 0x107   :  { %v669_v19 = vpack.c.bf16 %v445_v13, %v445_v13  ;;  %v369_v20 = vadd.f32 %v729_v14, %v997_v45  ;;  %v683_v21 = vpack.c.bf16 %v459_v15, %v459_v15  ;;  %v425_v22 = vadd.f32 %v771_v16, %v997_v45 }
 0x108   :  { %v731_v23 = vpop.f32.mrf.mxu0  ;;  %v773_v24 = vpop.f32.mrf.mxu1 }
 0x109   :  { %572 = vst.msk [vmem:[%s1127_s3 + $0x1c] sm:$0xf] %vm564_vm0, %v669_v19  ;;  %v446_v25 = vmax.f32 %v369_v20, 0.0  ;;  %586 = vst.msk [vmem:[%s1127_s3 + $0x54] sm:$0xf] %vm564_vm0, %v683_v21  ;;  %v732_v26 = vadd.f32 %v731_v23, %v730_v17  ;;  %v460_v27 = vmax.f32 %v425_v22, 0.0  ;;  %v774_v28 = vadd.f32 %v773_v24, %v772_v18 }
 0x10a   :  { %v733_v29 = vpop.f32.mrf.mxu0  ;;  %v775_v30 = vpop.f32.mrf.mxu1 }
 0x10b   :  { %v670_v31 = vpack.c.bf16 %v446_v25, %v446_v25  ;;  %v372_v32 = vadd.f32 %v732_v26, %v997_v45  ;;  %v684_v33 = vpack.c.bf16 %v460_v27, %v460_v27  ;;  %v428_v34 = vadd.f32 %v774_v28, %v997_v45 }
 0x10c   :  { %v734_v35 = vpop.f32.mrf.mxu0  ;;  %v776_v36 = vpop.f32.mrf.mxu1 }
 0x10d   :  { %573 = vst.msk [vmem:[%s1127_s3 + $0x20] sm:$0xf] %vm564_vm0, %v670_v31  ;;  %v447_v37 = vmax.f32 %v372_v32, 0.0  ;;  %587 = vst.msk [vmem:[%s1127_s3 + $0x58] sm:$0xf] %vm564_vm0, %v684_v33  ;;  %v735_v38 = vadd.f32 %v734_v35, %v733_v29  ;;  %v461_v39 = vmax.f32 %v428_v34, 0.0  ;;  %v777_v40 = vadd.f32 %v776_v36, %v775_v30 }
 0x10e   :  { %v736_v41 = vpop.f32.mrf.mxu0  ;;  %v778_v42 = vpop.f32.mrf.mxu1 }
 0x10f   :  { %v671_v43 = vpack.c.bf16 %v447_v37, %v447_v37  ;;  %v377_v44 = vadd.f32 %v735_v38, %v997_v45  ;;  %v685_v46 = vpack.c.bf16 %v461_v39, %v461_v39  ;;  %v433_v47 = vadd.f32 %v777_v40, %v997_v45 }
 0x110   :  { %v737_v48 = vpop.f32.mrf.mxu0  ;;  %v779_v49 = vpop.f32.mrf.mxu1 }
 0x111   :  { %574 = vst.msk [vmem:[%s1127_s3 + $0x24] sm:$0xf] %vm564_vm0, %v671_v43  ;;  %v448_v50 = vmax.f32 %v377_v44, 0.0  ;;  %588 = vst.msk [vmem:[%s1127_s3 + $0x5c] sm:$0xf] %vm564_vm0, %v685_v46  ;;  %v738_v51 = vadd.f32 %v737_v48, %v736_v41  ;;  %v462_v52 = vmax.f32 %v433_v47, 0.0 }
 0x112   :  { %v739_v53 = vpop.f32.mrf.mxu0 }
 0x113   :  { %v672_v54 = vpack.c.bf16 %v448_v50, %v448_v50  ;;  %v380_v55 = vadd.f32 %v738_v51, %v997_v45  ;;  %v686_v56 = vpack.c.bf16 %v462_v52, %v462_v52 }
 0x114   :  { %v740_v57 = vpop.f32.mrf.mxu0 }
 0x115   :  { %575 = vst.msk [vmem:[%s1127_s3 + $0x28] sm:$0xf] %vm564_vm0, %v672_v54  ;;  %v449_v58 = vmax.f32 %v380_v55, 0.0  ;;  %589 = vst.msk [vmem:[%s1127_s3 + $0x60] sm:$0xf] %vm564_vm0, %v686_v56  ;;  %v741_v59 = vadd.f32 %v740_v57, %v739_v53 }
 0x116   :  { %v742_v60 = vpop.f32.mrf.mxu0 }
 0x117   :  { %v673_v61 = vpack.c.bf16 %v449_v58, %v449_v58  ;;  %v385_v62 = vadd.f32 %v741_v59, %v997_v45 }
 0x118   :  { %v743_v63 = vpop.f32.mrf.mxu0 }
 0x119   :  { %576 = vst.msk [vmem:[%s1127_s3 + $0x2c] sm:$0xf] %vm564_vm0, %v673_v61  ;;  %v450_v0 = vmax.f32 %v385_v62, 0.0  ;;  %v744_v1 = vadd.f32 %v743_v63, %v742_v60 }
 0x11b   :  { %v674_v2 = vpack.c.bf16 %v450_v0, %v450_v0  ;;  %v388_v3 = vadd.f32 %v744_v1, %v997_v45 }
 0x11d   :  { %577 = vst.msk [vmem:[%s1127_s3 + $0x30] sm:$0xf] %vm564_vm0, %v674_v2  ;;  %v451_v4 = vmax.f32 %v388_v3, 0.0 }
 0x11f   :  { %v675_v5 = vpack.c.bf16 %v451_v4, %v451_v4 }
 0x121   :  { %578 = vst.msk [vmem:[%s1127_s3 + $0x34] sm:$0xf] %vm564_vm0, %v675_v5 }

// kernel: dueling_dqn_forward.5
= control target key start
LH: loop header
LB: loop body
LE: loop exit
PB: predicated region body
PF: predicated region fallthrough
CT: control target
= control target key end

     0   :  { %vm444_vm0 = vcmask 519168   ;;  %s761_s1 = inlined_call_operand.vmem [shape: bf16[512,64], index: 1, kind: input, shape index: {}]   ;;  %s762_s0 = inlined_call_operand.vmem [shape: bf16[32,512], index: 0, kind: input, shape index: {}]   ;;  %s763_s2 = inlined_call_operand.vmem [shape: f32[1,64], index: 2, kind: input, shape index: {}]   ;;  %s764_s3 = inlined_call_operand.vmem [shape: bf16[32,64], index: 3, kind: output, shape index: {}]  }
   0x1   :  { %v558_v0 = vld [vmem:[%s761_s1 + $0x78] sm:$0xff]   ;;  %v562_v4 = vld [vmem:[%s761_s1 + $0x70] sm:$0xff]   ;;  %v566_v8 = vld [vmem:[%s761_s1 + $0x68] sm:$0xff]  }
   0x2   :  { %v559_v1 = vld [vmem:[%s761_s1 + $0xf8] sm:$0xff]   ;;  %502 = vmatprep.subr.bf16.mxu0 %v558_v0  ;;  %v563_v5 = vld [vmem:[%s761_s1 + $0xf0] sm:$0xff]   ;;  %v567_v9 = vld [vmem:[%s761_s1 + $0xe8] sm:$0xff]  }
   0x3   :  { %v560_v2 = vld [vmem:[%s761_s1 + $0x38] sm:$0xff]   ;;  %530 = vmatprep.subr.bf16.mxu1 %v559_v1  ;;  %v564_v6 = vld [vmem:[%s761_s1 + $0x30] sm:$0xff]   ;;  %v568_v10 = vld [vmem:[%s761_s1 + $0x28] sm:$0xff]  }
   0x4   :  { %v561_v3 = vld [vmem:[%s761_s1 + $0xb8] sm:$0xff]   ;;  %503 = vmatpush3.bf16.msra.mxu0 %v560_v2  ;;  %v565_v7 = vld [vmem:[%s761_s1 + $0xb0] sm:$0xff]   ;;  %v569_v11 = vld [vmem:[%s761_s1 + $0xa8] sm:$0xff]  }
   0x5   :  { %531 = vmatpush3.bf16.msra.mxu1 %v561_v3  ;;  %504 = vmatprep.subr.bf16.mxu0 %v562_v4  ;;  %v570_v12 = vld [vmem:[%s761_s1 + $0x60] sm:$0xff]   ;;  %v574_v16 = vld [vmem:[%s761_s1 + $0x58] sm:$0xff]   ;;  %v578_v20 = vld [vmem:[%s761_s1 + $0x50] sm:$0xff]  }
   0x6   :  { %532 = vmatprep.subr.bf16.mxu1 %v563_v5  ;;  %v571_v13 = vld [vmem:[%s761_s1 + $0xe0] sm:$0xff]   ;;  %v575_v17 = vld [vmem:[%s761_s1 + $0xd8] sm:$0xff]   ;;  %v579_v21 = vld [vmem:[%s761_s1 + $0xd0] sm:$0xff]  }
   0x7   :  { %v572_v14 = vld [vmem:[%s761_s1 + $0x20] sm:$0xff]   ;;  %v576_v18 = vld [vmem:[%s761_s1 + $0x18] sm:$0xff]   ;;  %v580_v22 = vld [vmem:[%s761_s1 + $0x10] sm:$0xff]  }
   0x8   :  { %505 = vmatpush3.bf16.msra.mxu0 %v564_v6  ;;  %v573_v15 = vld [vmem:[%s761_s1 + $0xa0] sm:$0xff]   ;;  %v577_v19 = vld [vmem:[%s761_s1 + $0x98] sm:$0xff]   ;;  %v581_v23 = vld [vmem:[%s761_s1 + $0x90] sm:$0xff]  }
   0x9   :  { %533 = vmatpush3.bf16.msra.mxu1 %v565_v7  ;;  %506 = vmatprep.subr.bf16.mxu0 %v566_v8  ;;  %v582_v24 = vld [vmem:[%s761_s1 + $0x48] sm:$0xff]   ;;  %v586_v28 = vld [vmem:[%s761_s1 + $0x40] sm:$0xff]  }
   0xa   :  { %534 = vmatprep.subr.bf16.mxu1 %v567_v9  ;;  %v583_v25 = vld [vmem:[%s761_s1 + $0xc8] sm:$0xff]   ;;  %v587_v29 = vld [vmem:[%s761_s1 + $0xc0] sm:$0xff]  }
   0xb   :  { %v584_v26 = vld [vmem:[%s761_s1 + $0x8] sm:$0xff]   ;;  %v588_v30 = vld [vmem:[%s761_s1] sm:$0xff]  }
   0xc   :  { %507 = vmatpush3.bf16.msra.mxu0 %v568_v10  ;;  %v585_v27 = vld [vmem:[%s761_s1 + $0x88] sm:$0xff]   ;;  %v589_v31 = vld [vmem:[%s761_s1 + $0x80] sm:$0xff]  }
   0xd   :  { %535 = vmatpush3.bf16.msra.mxu1 %v569_v11  ;;  %508 = vmatprep.subr.bf16.mxu0 %v570_v12  ;;  %v590_v32 = vld [vmem:[%s762_s0] ss:$16 sps:$4 sm:$0xff]   ;;  %v592_v33 = vld [vmem:[%s762_s0 + $0x4] ss:$16 sps:$4 sm:$0xff]   ;;  %v593_v34 = vld [vmem:[%s762_s0 + $0x8] ss:$16 sps:$4 sm:$0xff]  }
   0xe   :  { %536 = vmatprep.subr.bf16.mxu1 %v571_v13  ;;  %v595_v35 = vld [vmem:[%s762_s0 + $0xc] ss:$16 sps:$4 sm:$0xff]   ;;  %358 = vmatprep.mubr.bf16.mxu0 %v592_v33  ;;  %v596_v36 = vld [vmem:[%s762_s0 + $0x24] ss:$16 sps:$4 sm:$0xff]   ;;  %v600_v38 = vld [vmem:[%s762_s0 + $0x20] ss:$16 sps:$4 sm:$0xff]  }
   0xf   :  { %407 = vmatprep.mubr.bf16.mxu1 %v595_v35  ;;  %v598_v37 = vld [vmem:[%s762_s0 + $0x2c] ss:$16 sps:$4 sm:$0xff]   ;;  %v601_v39 = vld [vmem:[%s762_s0 + $0x28] ss:$16 sps:$4 sm:$0xff]   ;;  %v453_v42 = vld [vmem:[%s763_s2] ss:$0 sm:$0xff] }
  0x10   :  { %509 = vmatpush3.bf16.msra.mxu0 %v572_v14 }
  0x11   :  { %537 = vmatpush3.bf16.msra.mxu1 %v573_v15  ;;  %510 = vmatprep.subr.bf16.mxu0 %v574_v16 }
  0x12   :  { %538 = vmatprep.subr.bf16.mxu1 %v575_v17 }
  0x14   :  { %511 = vmatpush3.bf16.msra.mxu0 %v576_v18 }
  0x15   :  { %539 = vmatpush3.bf16.msra.mxu1 %v577_v19  ;;  %512 = vmatprep.subr.bf16.mxu0 %v578_v20 }
  0x16   :  { %540 = vmatprep.subr.bf16.mxu1 %v579_v21 }
  0x18   :  { %513 = vmatpush3.bf16.msra.mxu0 %v580_v22 }
  0x19   :  { %541 = vmatpush3.bf16.msra.mxu1 %v581_v23  ;;  %514 = vmatprep.subr.bf16.mxu0 %v582_v24 }
  0x1a   :  { %542 = vmatprep.subr.bf16.mxu1 %v583_v25 }
  0x1c   :  { %515 = vmatpush3.bf16.msra.mxu0 %v584_v26 }
  0x1d   :  { %543 = vmatpush3.bf16.msra.mxu1 %v585_v27  ;;  %516 = vmatprep.subr.bf16.mxu0 %v586_v28 }
  0x1e   :  { %544 = vmatprep.subr.bf16.mxu1 %v587_v29 }
  0x20   :  { %517 = vmatpush3.bf16.msra.mxu0 %v588_v30 }
  0x21   :  { %545 = vmatpush3.bf16.msra.mxu1 %v589_v31 }
  0x23   :  { %359 = vmatmul.mubr.bf16.vlgmr.msra.gmra.mxu0 %v590_v32 }
  0x24   :  { %408 = vmatmul.mubr.bf16.vlgmr.msra.gmra.mxu1 %v593_v34  ;;  %366 = vmatprep.mubr.bf16.mxu0 %v596_v36 }
  0x25   :  { %415 = vmatprep.mubr.bf16.mxu1 %v598_v37 }
  0x2b   :  { %367 = vmatmul.mubr.bf16.gmra.mxu0 %v600_v38 }
  0x2c   :  { %416 = vmatmul.mubr.bf16.gmra.mxu1 %v601_v39 }
  0xe3   :  { %v518_v40 = vpop.f32.mrf.mxu0 }
  0xe4   :  { %v546_v41 = vpop.f32.mrf.mxu1 }
  0xe5   :  { %v519_v43 = vpop.f32.mrf.mxu0 }
  0xe6   :  { %v520_v44 = vadd.f32 %v519_v43, %v518_v40  ;;  %v547_v45 = vpop.f32.mrf.mxu1 }
  0xe7   :  { %v521_v46 = vpop.f32.mrf.mxu0  ;;  %v548_v48 = vadd.f32 %v547_v45, %v546_v41 }
  0xe8   :  { %v361_v47 = vadd.f32 %v520_v44, %v453_v42  ;;  %v549_v49 = vpop.f32.mrf.mxu1 }
  0xe9   :  { %v522_v50 = vpop.f32.mrf.mxu0 }
  0xea   :  { %v410_v51 = vadd.f32 %v548_v48, %v361_v47  ;;  %v523_v52 = vadd.f32 %v522_v50, %v521_v46  ;;  %v550_v53 = vpop.f32.mrf.mxu1 }
  0xeb   :  { %v524_v54 = vpop.f32.mrf.mxu0  ;;  %v551_v57 = vadd.f32 %v550_v53, %v549_v49 }
  0xec   :  { %v424_v55 = vmax.f32 %v410_v51, 0.0  ;;  %v364_v56 = vadd.f32 %v523_v52, %v453_v42  ;;  %v552_v58 = vpop.f32.mrf.mxu1 }
  0xed   :  { %v525_v59 = vpop.f32.mrf.mxu0 }
  0xee   :  { %v498_v60 = vpack.c.bf16 %v424_v55, %v424_v55  ;;  %v413_v61 = vadd.f32 %v551_v57, %v364_v56  ;;  %v526_v62 = vadd.f32 %v525_v59, %v524_v54  ;;  %v553_v63 = vpop.f32.mrf.mxu1 }
  0xef   :  { %v527_v0 = vpop.f32.mrf.mxu0  ;;  %v554_v3 = vadd.f32 %v553_v63, %v552_v58 }
  0xf0   :  { %445 = vst.msk [vmem:[%s764_s3] sm:$0xf] %vm444_vm0, %v498_v60  ;;  %v425_v1 = vmax.f32 %v413_v61, 0.0  ;;  %v369_v2 = vadd.f32 %v526_v62, %v453_v42  ;;  %v555_v4 = vpop.f32.mrf.mxu1 }
  0xf1   :  { %v528_v5 = vpop.f32.mrf.mxu0 }
  0xf2   :  { %v499_v6 = vpack.c.bf16 %v425_v1, %v425_v1  ;;  %v418_v7 = vadd.f32 %v554_v3, %v369_v2  ;;  %v529_v8 = vadd.f32 %v528_v5, %v527_v0  ;;  %v556_v9 = vpop.f32.mrf.mxu1 }
  0xf3   :  { %v557_v12 = vadd.f32 %v556_v9, %v555_v4 }
  0xf4   :  { %446 = vst.msk [vmem:[%s764_s3 + $0x4] sm:$0xf] %vm444_vm0, %v499_v6  ;;  %v426_v10 = vmax.f32 %v418_v7, 0.0  ;;  %v372_v11 = vadd.f32 %v529_v8, %v453_v42 }
  0xf6   :  { %v500_v13 = vpack.c.bf16 %v426_v10, %v426_v10  ;;  %v421_v14 = vadd.f32 %v557_v12, %v372_v11 }
  0xf8   :  { %447 = vst.msk [vmem:[%s764_s3 + $0x8] sm:$0xf] %vm444_vm0, %v500_v13  ;;  %v427_v15 = vmax.f32 %v421_v14, 0.0 }
  0xfa   :  { %v501_v16 = vpack.c.bf16 %v427_v15, %v427_v15 }
  0xfc   :  { %448 = vst.msk [vmem:[%s764_s3 + $0xc] sm:$0xf] %vm444_vm0, %v501_v16 }

// kernel: dueling_dqn_forward.6
= control target key start
LH: loop header
LB: loop body
LE: loop exit
PB: predicated region body
PF: predicated region fallthrough
CT: control target
= control target key end

     0   :  { %v609_v35 = vmov 0.0   ;;  %vm610_vm0 = vmmov 0   ;;  %vm330_vm1 = vcmask 523264   ;;  %vm456_vm2 = vcmask 519168   ;;  %s754_s1 = inlined_call_operand.vmem [shape: bf16[576,64], index: 1, kind: input, shape index: {}]   ;;  %s755_s0 = inlined_call_operand.vmem [shape: bf16[8,576], index: 0, kind: input, shape index: {}]   ;;  %s756_s2 = inlined_call_operand.vmem [shape: f32[1,64], index: 2, kind: input, shape index: {}]   ;;  %s757_s3 = inlined_call_operand.vmem [shape: bf16[8,64], index: 3, kind: output, shape index: {}]  }
   0x1   :  { %v568_v0 = vld [vmem:[%s754_s1 + $0x78] sm:$0xff]   ;;  %v572_v4 = vld [vmem:[%s754_s1 + $0x70] sm:$0xff]   ;;  %v576_v8 = vld [vmem:[%s754_s1 + $0x68] sm:$0xff]  }
   0x2   :  { %v569_v1 = vld [vmem:[%s754_s1 + $0x38] sm:$0xff]   ;;  %505 = vmatprep.subr.bf16.mxu0 %v568_v0  ;;  %v573_v5 = vld [vmem:[%s754_s1 + $0x30] sm:$0xff]   ;;  %v577_v9 = vld [vmem:[%s754_s1 + $0x28] sm:$0xff]  }
   0x3   :  { %v570_v2 = vld [vmem:[%s754_s1 + $0xf8] sm:$0xff]   ;;  %506 = vmatpush3.bf16.msra.mxu0 %v569_v1  ;;  %v574_v6 = vld [vmem:[%s754_s1 + $0xf0] sm:$0xff]   ;;  %v578_v10 = vld [vmem:[%s754_s1 + $0xe8] sm:$0xff]  }
   0x4   :  { %v571_v3 = vld [vmem:[%s754_s1 + $0xb8] sm:$0xff]   ;;  %527 = vmatprep.subr.bf16.mxu1 %v570_v2  ;;  %507 = vmatprep.subr.bf16.mxu0 %v572_v4  ;;  %v575_v7 = vld [vmem:[%s754_s1 + $0xb0] sm:$0xff]   ;;  %v579_v11 = vld [vmem:[%s754_s1 + $0xa8] sm:$0xff]  }
   0x5   :  { %528 = vmatpush3.bf16.msra.mxu1 %v571_v3  ;;  %v580_v12 = vld [vmem:[%s754_s1 + $0x60] sm:$0xff]   ;;  %v584_v16 = vld [vmem:[%s754_s1 + $0x58] sm:$0xff]   ;;  %v588_v20 = vld [vmem:[%s754_s1 + $0x50] sm:$0xff]  }
   0x6   :  { %529 = vmatprep.subr.bf16.mxu1 %v574_v6  ;;  %v581_v13 = vld [vmem:[%s754_s1 + $0x20] sm:$0xff]   ;;  %v585_v17 = vld [vmem:[%s754_s1 + $0x18] sm:$0xff]   ;;  %v589_v21 = vld [vmem:[%s754_s1 + $0x10] sm:$0xff]  }
   0x7   :  { %508 = vmatpush3.bf16.msra.mxu0 %v573_v5  ;;  %v582_v14 = vld [vmem:[%s754_s1 + $0xe0] sm:$0xff]   ;;  %v586_v18 = vld [vmem:[%s754_s1 + $0xd8] sm:$0xff]   ;;  %v590_v22 = vld [vmem:[%s754_s1 + $0xd0] sm:$0xff]  }
   0x8   :  { %509 = vmatprep.subr.bf16.mxu0 %v576_v8  ;;  %v583_v15 = vld [vmem:[%s754_s1 + $0xa0] sm:$0xff]   ;;  %v587_v19 = vld [vmem:[%s754_s1 + $0x98] sm:$0xff]   ;;  %v591_v23 = vld [vmem:[%s754_s1 + $0x90] sm:$0xff]  }
   0x9   :  { %530 = vmatpush3.bf16.msra.mxu1 %v575_v7  ;;  %v592_v24 = vld [vmem:[%s754_s1 + $0x48] sm:$0xff]   ;;  %v596_v28 = vld [vmem:[%s754_s1 + $0x40] sm:$0xff]   ;;  %v605_v39 = vld [vmem:[%s754_s1 + $0x118] sm:$0xff]  }
   0xa   :  { %531 = vmatprep.subr.bf16.mxu1 %v578_v10  ;;  %v593_v25 = vld [vmem:[%s754_s1 + $0x8] sm:$0xff]   ;;  %v597_v29 = vld [vmem:[%s754_s1] sm:$0xff]   ;;  %v606_v40 = vld [vmem:[%s754_s1 + $0x110] sm:$0xff]  }
   0xb   :  { %510 = vmatpush3.bf16.msra.mxu0 %v577_v9  ;;  %v594_v26 = vld [vmem:[%s754_s1 + $0xc8] sm:$0xff]   ;;  %v598_v30 = vld [vmem:[%s754_s1 + $0xc0] sm:$0xff]   ;;  %v601_v43 = vld [vmem:[%s755_s0 + $0x10] ss:$0 sps:$4 sm:$0xff]  }
   0xc   :  { %511 = vmatprep.subr.bf16.mxu0 %v580_v12  ;;  %v595_v27 = vld [vmem:[%s754_s1 + $0x88] sm:$0xff]   ;;  %v15_v31 = vld [vmem:[%s755_s0] sm:$0xff] }
   0xd   :  { %532 = vmatpush3.bf16.msra.mxu1 %v579_v11  ;;  %v463_v32 = vcombine.low %v15_v31, %v15_v31  ;;  %v464_v33 = vcombine.high %v15_v31, %v15_v31  ;;  %v602_v34 = vld [vmem:[%s754_s1 + $0x80] sm:$0xff]   ;;  %v16_v36 = vld [vmem:[%s755_s0 + $0x8] sm:$0xff] }
   0xe   :  { %533 = vmatprep.subr.bf16.mxu1 %v582_v14  ;;  %v465_v37 = vcombine.low %v16_v36, %v16_v36  ;;  %v466_v38 = vcombine.high %v16_v36, %v16_v36  ;;  %v607_v41 = vld [vmem:[%s754_s1 + $0x108] sm:$0xff]   ;;  %v608_v42 = vld [vmem:[%s754_s1 + $0x100] sm:$0xff]  }
   0xf   :  { %512 = vmatpush3.bf16.msra.mxu0 %v581_v13  ;;  %366 = vmatprep.mubr.bf16.mxu0 %v464_v33  ;;  %v462_v52 = vld [vmem:[%s756_s2] ss:$0 sm:$0xff] }
  0x10   :  { %513 = vmatprep.subr.bf16.mxu0 %v584_v16  ;;  %406 = vmatprep.mubr.bf16.mxu1 %v466_v38 }
  0x11   :  { %534 = vmatpush3.bf16.msra.mxu1 %v583_v15 }
  0x12   :  { %535 = vmatprep.subr.bf16.mxu1 %v586_v18 }
  0x13   :  { %514 = vmatpush3.bf16.msra.mxu0 %v585_v17 }
  0x14   :  { %515 = vmatprep.subr.bf16.mxu0 %v588_v20 }
  0x15   :  { %536 = vmatpush3.bf16.msra.mxu1 %v587_v19 }
  0x16   :  { %537 = vmatprep.subr.bf16.mxu1 %v590_v22 }
  0x17   :  { %516 = vmatpush3.bf16.msra.mxu0 %v589_v21 }
  0x18   :  { %517 = vmatprep.subr.bf16.mxu0 %v592_v24 }
  0x19   :  { %538 = vmatpush3.bf16.msra.mxu1 %v591_v23 }
  0x1a   :  { %539 = vmatprep.subr.bf16.mxu1 %v594_v26 }
  0x1b   :  { %518 = vmatpush3.bf16.msra.mxu0 %v593_v25 }
  0x1c   :  { %519 = vmatprep.subr.bf16.mxu0 %v596_v28 }
  0x1d   :  { %540 = vmatpush3.bf16.msra.mxu1 %v595_v27 }
  0x1e   :  { %541 = vmatprep.subr.bf16.mxu1 %v598_v30 }
  0x1f   :  { %520 = vmatpush3.bf16.msra.mxu0 %v597_v29 }
  0x20   :  { %554 = vmatprep.subr.bf16.mxu0 %v609_v35 }
  0x21   :  { %542 = vmatpush3.bf16.msra.mxu1 %v602_v34 }
  0x22   :  { %367 = vmatmul.mubr.bf16.vlgmr.msra.gmra.mxu0 %v463_v32 }
  0x23   :  { %555 = vmatpush3.bf16.msra.mxu0 %v605_v39  ;;  %562 = vmatprep.mubr.msk.bf16.mxu0 %vm610_vm0, %v609_v35 }
  0x24   :  { %407 = vmatmul.mubr.bf16.vlgmr.msra.gmra.mxu1 %v465_v37  ;;  %556 = vmatprep.subr.bf16.mxu0 %v609_v35 }
  0x27   :  { %557 = vmatpush3.bf16.msra.mxu0 %v606_v40 }
  0x28   :  { %558 = vmatprep.subr.bf16.mxu0 %v609_v35 }
  0x2b   :  { %559 = vmatpush3.bf16.msra.mxu0 %v607_v41 }
  0x2c   :  { %560 = vmatprep.subr.bf16.mxu0 %v609_v35 }
  0x2f   :  { %561 = vmatpush3.bf16.msra.mxu0 %v608_v42 }
  0x32   :  { %563 = vmatmul.mubr.msk.bf16.vlgmr.msra.gmra.mxu0 %vm330_vm1, %v601_v43 }
  0xe2   :  { %v521_v44 = vpop.f32.mrf.mxu0 }
  0xe4   :  { %v522_v45 = vpop.f32.mrf.mxu0  ;;  %v543_v46 = vpop.f32.mrf.mxu1 }
  0xe5   :  { %v523_v51 = vadd.f32 %v522_v45, %v521_v44 }
  0xe6   :  { %v524_v47 = vpop.f32.mrf.mxu0  ;;  %v544_v48 = vpop.f32.mrf.mxu1 }
  0xe7   :  { %v369_v54 = vadd.f32 %v523_v51, %v462_v52  ;;  %v545_v55 = vadd.f32 %v544_v48, %v543_v46 }
  0xe8   :  { %v525_v49 = vpop.f32.mrf.mxu0  ;;  %v546_v50 = vpop.f32.mrf.mxu1 }
  0xe9   :  { %v409_v56 = vadd.f32 %v545_v55, %v369_v54 }
  0xea   :  { %v547_v53 = vpop.f32.mrf.mxu1 }
  0xf2   :  { %v448_v57 = vpop.f32.mrf.mxu0 }
  0xf3   :  { %v449_v58 = vadd.f32 %v448_v57, %v409_v56 }
  0xf4   :  { %v564_v59 = vpop.f32.mrf.mxu0 }
  0xf5   :  { %v454_v60 = vmax.f32 %v449_v58, 0.0 }
  0xf6   :  { %v451_v61 = vpop.f32.mrf.mxu0 }
  0xf7   :  { %v455_v62 = vpack.c.bf16 %v454_v60, %v454_v60 }
  0xf8   :  { %v565_v63 = vpop.f32.mrf.mxu0 }
  0xf9   :  { %457 = vst.msk [vmem:[%s757_s3] sm:$0xf] %vm456_vm2, %v455_v62 }

// kernel: dueling_dqn_forward.7
= control target key start
LH: loop header
LB: loop body
LE: loop exit
PB: predicated region body
PF: predicated region fallthrough
CT: control target
= control target key end

     0   :  { %v153_v35 = vlaneseq  ;;  %v2128_v36 = vmov 1966171168   ;;  %s2793_s0 = inlined_call_operand.vmem [shape: bf16[2,256], index: 0, kind: input, shape index: {}]   ;;  %s2794_s1 = inlined_call_operand.vmem [shape: bf16[256,1024], index: 1, kind: input, shape index: {}]   ;;  %s2795_s2 = inlined_call_operand.vmem [shape: f32[1,1024], index: 2, kind: input, shape index: {}]   ;;  %s2796_s3 = inlined_call_operand.vmem [shape: bf16[1024,7], index: 3, kind: input, shape index: {}]   ;;  %s2797_s4 = inlined_call_operand.vmem [shape: f32[1,7], index: 4, kind: input, shape index: {}]   ;;  %s2798_s5 = inlined_call_operand.hbm [shape: f32[2,6], index: 5, kind: output, shape index: {}]  }
   0x1   :  { %v79_v0 = vld [vmem:[%s2794_s1 + $0x1c0] sm:$0xff]  ;;  %v80_v2 = vld [vmem:[%s2794_s1 + $0x1c8] sm:$0xff]  ;;  %v203_v37 = vunpack.c.l.s4 %v2128_v36 }
   0x2   :  { %v83_v1 = vld [vmem:[%s2794_s1 + $0x1e0] sm:$0xff]  ;;  %v84_v4 = vld [vmem:[%s2794_s1 + $0x1e8] sm:$0xff]  ;;  %v2233_v46 = vshrl.u32 %v153_v35, 7 }
   0x3   :  { %v1812_v3 = vcombine.high %v79_v0, %v83_v1  ;;  %v1811_v5 = vcombine.low %v79_v0, %v83_v1  ;;  %v71_v6 = vld [vmem:[%s2794_s1 + $0x180] sm:$0xff]  ;;  %v1814_v8 = vcombine.high %v80_v2, %v84_v4  ;;  %v1813_v9 = vcombine.low %v80_v2, %v84_v4  ;;  %v72_v11 = vld [vmem:[%s2794_s1 + $0x188] sm:$0xff] }
   0x4   :  { %v75_v7 = vld [vmem:[%s2794_s1 + $0x1a0] sm:$0xff]  ;;  %v76_v12 = vld [vmem:[%s2794_s1 + $0x1a8] sm:$0xff]  ;;  %v204_v47 = vunpack.c.0.s8 %v203_v37 }
   0x5   :  { %v1804_v10 = vcombine.high %v71_v6, %v75_v7  ;;  %v63_v13 = vld [vmem:[%s2794_s1 + $0x140] sm:$0xff]  ;;  %858 = vmatprep.subr.bf16.mxu0 %v1812_v3  ;;  %v1806_v14 = vcombine.high %v72_v11, %v76_v12  ;;  %v64_v16 = vld [vmem:[%s2794_s1 + $0x148] sm:$0xff]  ;;  %899 = vmatprep.subr.bf16.mxu1 %v1814_v8  ;;  %v1803_v18 = vcombine.low %v71_v6, %v75_v7 }
   0x6   :  { %v67_v15 = vld [vmem:[%s2794_s1 + $0x160] sm:$0xff]  ;;  %v68_v17 = vld [vmem:[%s2794_s1 + $0x168] sm:$0xff]  ;;  %859 = vmatpush1.bf16.msra.mxu0 %v1811_v5  ;;  %900 = vmatpush1.bf16.msra.mxu1 %v1813_v9  ;;  %v1805_v19 = vcombine.low %v72_v11, %v76_v12  ;;  %v2248_v56 = vsub.s32 %v204_v47, %v2233_v46 }
   0x7   :  { %860 = vmatprep.subr.bf16.mxu0 %v1804_v10  ;;  %v1796_v20 = vcombine.high %v63_v13, %v67_v15  ;;  %901 = vmatprep.subr.bf16.mxu1 %v1806_v14  ;;  %v1798_v21 = vcombine.high %v64_v16, %v68_v17  ;;  %v55_v22 = vld [vmem:[%s2794_s1 + $0x100] sm:$0xff]  ;;  %v56_v24 = vld [vmem:[%s2794_s1 + $0x108] sm:$0xff]  ;;  %v1795_v26 = vcombine.low %v63_v13, %v67_v15 }
   0x8   :  { %v59_v23 = vld [vmem:[%s2794_s1 + $0x120] sm:$0xff]  ;;  %v60_v25 = vld [vmem:[%s2794_s1 + $0x128] sm:$0xff]  ;;  %v1797_v27 = vcombine.low %v64_v16, %v68_v17 }
   0x9   :  { %v1788_v28 = vcombine.high %v55_v22, %v59_v23  ;;  %v1790_v29 = vcombine.high %v56_v24, %v60_v25  ;;  %v47_v30 = vld [vmem:[%s2794_s1 + $0xc0] sm:$0xff]  ;;  %v48_v32 = vld [vmem:[%s2794_s1 + $0xc8] sm:$0xff]  ;;  %v1787_v34 = vcombine.low %v55_v22, %v59_v23  ;;  %v1789_v38 = vcombine.low %v56_v24, %v60_v25 }
   0xa   :  { %861 = vmatpush1.bf16.msra.mxu0 %v1803_v18  ;;  %902 = vmatpush1.bf16.msra.mxu1 %v1805_v19  ;;  %v51_v31 = vld [vmem:[%s2794_s1 + $0xe0] sm:$0xff]  ;;  %v52_v33 = vld [vmem:[%s2794_s1 + $0xe8] sm:$0xff] }
   0xb   :  { %862 = vmatprep.subr.bf16.mxu0 %v1796_v20  ;;  %903 = vmatprep.subr.bf16.mxu1 %v1798_v21  ;;  %v1780_v39 = vcombine.high %v47_v30, %v51_v31  ;;  %v1782_v40 = vcombine.high %v48_v32, %v52_v33  ;;  %v39_v41 = vld [vmem:[%s2794_s1 + $0x80] sm:$0xff]  ;;  %v40_v43 = vld [vmem:[%s2794_s1 + $0x88] sm:$0xff]  ;;  %v1779_v45 = vcombine.low %v47_v30, %v51_v31 }
   0xc   :  { %v43_v42 = vld [vmem:[%s2794_s1 + $0xa0] sm:$0xff]  ;;  %v44_v44 = vld [vmem:[%s2794_s1 + $0xa8] sm:$0xff]  ;;  %v1781_v48 = vcombine.low %v48_v32, %v52_v33 }
   0xd   :  { %v1772_v49 = vcombine.high %v39_v41, %v43_v42  ;;  %v1774_v50 = vcombine.high %v40_v43, %v44_v44  ;;  %v31_v51 = vld [vmem:[%s2794_s1 + $0x40] sm:$0xff]  ;;  %v32_v53 = vld [vmem:[%s2794_s1 + $0x48] sm:$0xff]  ;;  %v1771_v55 = vcombine.low %v39_v41, %v43_v42  ;;  %v1773_v57 = vcombine.low %v40_v43, %v44_v44 }
   0xe   :  { %863 = vmatpush1.bf16.msra.mxu0 %v1795_v26  ;;  %904 = vmatpush1.bf16.msra.mxu1 %v1797_v27  ;;  %v35_v52 = vld [vmem:[%s2794_s1 + $0x60] sm:$0xff]  ;;  %v36_v54 = vld [vmem:[%s2794_s1 + $0x68] sm:$0xff] }
   0xf   :  { %864 = vmatprep.subr.bf16.mxu0 %v1788_v28  ;;  %905 = vmatprep.subr.bf16.mxu1 %v1790_v29  ;;  %v1764_v58 = vcombine.high %v31_v51, %v35_v52  ;;  %v2253_v59 = vld.sshfl [vmem:[%s2793_s0] sm:$0x11 pattern:$0x75316420]  ;;  %v1766_v60 = vcombine.high %v32_v53, %v36_v54  ;;  %v24_v0 = vld [vmem:[%s2794_s1 + $0x8] sm:$0xff]  ;;  %v1763_v2 = vcombine.low %v31_v51, %v35_v52 }
  0x10   :  { %v23_v61 = vld [vmem:[%s2794_s1] sm:$0xff]  ;;  %v201_v63 = vcombine.high %v2253_v59, %v2253_v59  ;;  %v28_v1 = vld [vmem:[%s2794_s1 + $0x28] sm:$0xff]  ;;  %v1765_v4 = vcombine.low %v32_v53, %v36_v54 }
  0x11   :  { %v27_v62 = vld [vmem:[%s2794_s1 + $0x20] sm:$0xff]  ;;  %v1758_v6 = vcombine.high %v24_v0, %v28_v1  ;;  %v144_v9 = vld [vmem:[%s2794_s1 + $0x3c8] sm:$0xff]  ;;  %v1757_v12 = vcombine.low %v24_v0, %v28_v1 }
  0x12   :  { %865 = vmatpush1.bf16.msra.mxu0 %v1787_v34  ;;  %906 = vmatpush1.bf16.msra.mxu1 %v1789_v38  ;;  %v2270_v3 = vrot.slane %v201_v63, %v2248_v56  ;;  %v1756_v5 = vcombine.high %v23_v61, %v27_v62  ;;  %v143_v7 = vld [vmem:[%s2794_s1 + $0x3c0] sm:$0xff]  ;;  %v148_v10 = vld [vmem:[%s2794_s1 + $0x3e8] sm:$0xff]  ;;  %v1755_v11 = vcombine.low %v23_v61, %v27_v62 }
  0x13   :  { %866 = vmatprep.subr.bf16.mxu0 %v1780_v39  ;;  %907 = vmatprep.subr.bf16.mxu1 %v1782_v40  ;;  %v147_v8 = vld [vmem:[%s2794_s1 + $0x3e0] sm:$0xff]  ;;  %v1878_v14 = vcombine.high %v144_v9, %v148_v10  ;;  %v136_v17 = vld [vmem:[%s2794_s1 + $0x388] sm:$0xff]  ;;  %v1877_v20 = vcombine.low %v144_v9, %v148_v10 }
  0x14   :  { %890 = vmatprep.mubr.bf16.mxu0 %v2270_v3  ;;  %931 = vmatprep.mubr.bf16.mxu1 %v2270_v3  ;;  %v1876_v13 = vcombine.high %v143_v7, %v147_v8  ;;  %v135_v15 = vld [vmem:[%s2794_s1 + $0x380] sm:$0xff]  ;;  %v140_v18 = vld [vmem:[%s2794_s1 + $0x3a8] sm:$0xff]  ;;  %v1875_v19 = vcombine.low %v143_v7, %v147_v8  ;;  %v81_v8 = vld [vmem:[%s2794_s1 + $0x1d0] sm:$0xff] }
  0x15   :  { %v139_v16 = vld [vmem:[%s2794_s1 + $0x3a0] sm:$0xff]  ;;  %v1870_v22 = vcombine.high %v136_v17, %v140_v18  ;;  %v128_v25 = vld [vmem:[%s2794_s1 + $0x348] sm:$0xff]  ;;  %v1869_v28 = vcombine.low %v136_v17, %v140_v18 }
  0x16   :  { %867 = vmatpush1.bf16.msra.mxu0 %v1779_v45  ;;  %908 = vmatpush1.bf16.msra.mxu1 %v1781_v48  ;;  %v1868_v21 = vcombine.high %v135_v15, %v139_v16  ;;  %v127_v23 = vld [vmem:[%s2794_s1 + $0x340] sm:$0xff]  ;;  %v132_v26 = vld [vmem:[%s2794_s1 + $0x368] sm:$0xff]  ;;  %v1867_v27 = vcombine.low %v135_v15, %v139_v16  ;;  %v73_v16 = vld [vmem:[%s2794_s1 + $0x190] sm:$0xff] }
  0x17   :  { %868 = vmatprep.subr.bf16.mxu0 %v1772_v49  ;;  %909 = vmatprep.subr.bf16.mxu1 %v1774_v50  ;;  %v131_v24 = vld [vmem:[%s2794_s1 + $0x360] sm:$0xff]  ;;  %v1862_v30 = vcombine.high %v128_v25, %v132_v26  ;;  %v120_v33 = vld [vmem:[%s2794_s1 + $0x308] sm:$0xff]  ;;  %v1861_v36 = vcombine.low %v128_v25, %v132_v26  ;;  %v65_v25 = vld [vmem:[%s2794_s1 + $0x150] sm:$0xff] }
  0x18   :  { %v1860_v29 = vcombine.high %v127_v23, %v131_v24  ;;  %v119_v31 = vld [vmem:[%s2794_s1 + $0x300] sm:$0xff]  ;;  %v124_v34 = vld [vmem:[%s2794_s1 + $0x328] sm:$0xff]  ;;  %v1859_v35 = vcombine.low %v127_v23, %v131_v24  ;;  %v78_v23 = vld [vmem:[%s2794_s1 + $0x1b8] sm:$0xff] }
  0x19   :  { %v123_v32 = vld [vmem:[%s2794_s1 + $0x320] sm:$0xff]  ;;  %v1854_v38 = vcombine.high %v120_v33, %v124_v34  ;;  %v112_v41 = vld [vmem:[%s2794_s1 + $0x2c8] sm:$0xff]  ;;  %v1853_v45 = vcombine.low %v120_v33, %v124_v34 }
  0x1a   :  { %869 = vmatpush1.bf16.msra.mxu0 %v1771_v55  ;;  %910 = vmatpush1.bf16.msra.mxu1 %v1773_v57  ;;  %v1852_v37 = vcombine.high %v119_v31, %v123_v32  ;;  %v111_v39 = vld [vmem:[%s2794_s1 + $0x2c0] sm:$0xff]  ;;  %v116_v42 = vld [vmem:[%s2794_s1 + $0x2e8] sm:$0xff]  ;;  %v1851_v43 = vcombine.low %v119_v31, %v123_v32  ;;  %v57_v31 = vld [vmem:[%s2794_s1 + $0x110] sm:$0xff] }
  0x1b   :  { %870 = vmatprep.subr.bf16.mxu0 %v1764_v58  ;;  %911 = vmatprep.subr.bf16.mxu1 %v1766_v60  ;;  %v115_v40 = vld [vmem:[%s2794_s1 + $0x2e0] sm:$0xff]  ;;  %v1846_v49 = vcombine.high %v112_v41, %v116_v42  ;;  %v104_v50 = vld [vmem:[%s2794_s1 + $0x288] sm:$0xff]  ;;  %v1845_v54 = vcombine.low %v112_v41, %v116_v42  ;;  %v61_v32 = vld [vmem:[%s2794_s1 + $0x130] sm:$0xff] }
  0x1c   :  { %v103_v44 = vld [vmem:[%s2794_s1 + $0x280] sm:$0xff]  ;;  %v1844_v47 = vcombine.high %v111_v39, %v115_v40  ;;  %v108_v51 = vld [vmem:[%s2794_s1 + $0x2a8] sm:$0xff]  ;;  %v1843_v52 = vcombine.low %v111_v39, %v115_v40  ;;  %v49_v39 = vld [vmem:[%s2794_s1 + $0xd0] sm:$0xff]  ;;  %v1792_v42 = vcombine.high %v57_v31, %v61_v32 }
  0x1d   :  { %v107_v48 = vld [vmem:[%s2794_s1 + $0x2a0] sm:$0xff]  ;;  %v1838_v58 = vcombine.high %v104_v50, %v108_v51  ;;  %v96_v60 = vld [vmem:[%s2794_s1 + $0x248] sm:$0xff]  ;;  %v1837_v0 = vcombine.low %v104_v50, %v108_v51  ;;  %v53_v40 = vld [vmem:[%s2794_s1 + $0xf0] sm:$0xff] }
  0x1e   :  { %871 = vmatpush1.bf16.msra.mxu0 %v1763_v2  ;;  %912 = vmatpush1.bf16.msra.mxu1 %v1765_v4  ;;  %v95_v53 = vld [vmem:[%s2794_s1 + $0x240] sm:$0xff]  ;;  %v1836_v55 = vcombine.high %v103_v44, %v107_v48  ;;  %v100_v61 = vld [vmem:[%s2794_s1 + $0x268] sm:$0xff]  ;;  %v1835_v62 = vcombine.low %v103_v44, %v107_v48  ;;  %v45_v48 = vld [vmem:[%s2794_s1 + $0xb0] sm:$0xff]  ;;  %v1784_v50 = vcombine.high %v49_v39, %v53_v40 }
  0x1f   :  { %872 = vmatprep.subr.bf16.mxu0 %v1756_v5  ;;  %913 = vmatprep.subr.bf16.mxu1 %v1758_v6  ;;  %v99_v57 = vld [vmem:[%s2794_s1 + $0x260] sm:$0xff]  ;;  %v1830_v4 = vcombine.high %v96_v60, %v100_v61  ;;  %v88_v5 = vld [vmem:[%s2794_s1 + $0x208] sm:$0xff]  ;;  %v1829_v9 = vcombine.low %v96_v60, %v100_v61  ;;  %v42_v51 = vld [vmem:[%s2794_s1 + $0x98] sm:$0xff] }
  0x20   :  { %v87_v63 = vld [vmem:[%s2794_s1 + $0x200] sm:$0xff]  ;;  %v1828_v1 = vcombine.high %v95_v53, %v99_v57  ;;  %v92_v6 = vld [vmem:[%s2794_s1 + $0x228] sm:$0xff]  ;;  %v1827_v7 = vcombine.low %v95_v53, %v99_v57  ;;  %v37_v57 = vld [vmem:[%s2794_s1 + $0x70] sm:$0xff] }
  0x21   :  { %v91_v2 = vld [vmem:[%s2794_s1 + $0x220] sm:$0xff]  ;;  %v1821_v17 = vcombine.low %v88_v5, %v92_v6  ;;  %v34_v61 = vld [vmem:[%s2794_s1 + $0x58] sm:$0xff] }
  0x22   :  { %873 = vmatpush1.bf16.msra.mxu0 %v1755_v11  ;;  %914 = vmatpush1.bf16.msra.mxu1 %v1757_v12  ;;  %v1820_v10 = vcombine.high %v87_v63, %v91_v2  ;;  %v85_v11 = vld [vmem:[%s2794_s1 + $0x1f0] sm:$0xff]  ;;  %v1822_v12 = vcombine.high %v88_v5, %v92_v6  ;;  %v1819_v15 = vcombine.low %v87_v63, %v91_v2  ;;  %v26_v6 = vld [vmem:[%s2794_s1 + $0x18] sm:$0xff] }
  0x23   :  { %874 = vmatprep.subr.bf16.mxu0 %v1876_v13  ;;  %915 = vmatprep.subr.bf16.mxu1 %v1878_v14  ;;  %v82_v13 = vld [vmem:[%s2794_s1 + $0x1d8] sm:$0xff]  ;;  %v1816_v18 = vcombine.high %v81_v8, %v85_v11  ;;  %v1815_v24 = vcombine.low %v81_v8, %v85_v11  ;;  %v29_v2 = vld [vmem:[%s2794_s1 + $0x30] sm:$0xff] }
  0x24   :  { %v86_v14 = vld [vmem:[%s2794_s1 + $0x1f8] sm:$0xff]  ;;  %v149_v11 = vld [vmem:[%s2794_s1 + $0x3f0] sm:$0xff] }
  0x25   :  { %v1817_v26 = vcombine.low %v82_v13, %v86_v14 }
  0x26   :  { %875 = vmatpush2.bf16.msra.mxu0 %v1875_v19  ;;  %916 = vmatpush2.bf16.msra.mxu1 %v1877_v20  ;;  %v77_v19 = vld [vmem:[%s2794_s1 + $0x1b0] sm:$0xff]  ;;  %v1818_v20 = vcombine.high %v82_v13, %v86_v14  ;;  %v146_v14 = vld [vmem:[%s2794_s1 + $0x3d8] sm:$0xff] }
  0x27   :  { %876 = vmatprep.subr.bf16.mxu0 %v1868_v21  ;;  %917 = vmatprep.subr.bf16.mxu1 %v1870_v22  ;;  %v74_v21 = vld [vmem:[%s2794_s1 + $0x198] sm:$0xff]  ;;  %v2393_v22 = vrot.slane %v2253_v59, %v2248_v56 }
  0x28   :  { %v1810_v56 = vcombine.high %v74_v21, %v78_v23  ;;  %v66_v59 = vld [vmem:[%s2794_s1 + $0x158] sm:$0xff]  ;;  %v1809_v33 = vcombine.low %v74_v21, %v78_v23  ;;  %v137_v21 = vld [vmem:[%s2794_s1 + $0x390] sm:$0xff] }
  0x29   :  { %v141_v23 = vld [vmem:[%s2794_s1 + $0x3b0] sm:$0xff] }
  0x2a   :  { %877 = vmatpush2.bf16.msra.mxu0 %v1867_v27  ;;  %918 = vmatpush2.bf16.msra.mxu1 %v1869_v28  ;;  %v1808_v27 = vcombine.high %v73_v16, %v77_v19  ;;  %v69_v28 = vld [vmem:[%s2794_s1 + $0x170] sm:$0xff] }
  0x2b   :  { %878 = vmatprep.subr.bf16.mxu0 %v1860_v29  ;;  %919 = vmatprep.subr.bf16.mxu1 %v1862_v30  ;;  %v70_v29 = vld [vmem:[%s2794_s1 + $0x178] sm:$0xff]  ;;  %v1807_v30 = vcombine.low %v73_v16, %v77_v19  ;;  %v1800_v34 = vcombine.high %v65_v25, %v69_v28 }
  0x2c   :  { %v1801_v41 = vcombine.low %v66_v59, %v70_v29 }
  0x2e   :  { %879 = vmatpush2.bf16.msra.mxu0 %v1859_v35  ;;  %920 = vmatpush2.bf16.msra.mxu1 %v1861_v36  ;;  %v58_v35 = vld [vmem:[%s2794_s1 + $0x118] sm:$0xff] }
  0x2f   :  { %880 = vmatprep.subr.bf16.mxu0 %v1852_v37  ;;  %921 = vmatprep.subr.bf16.mxu1 %v1854_v38  ;;  %v62_v36 = vld [vmem:[%s2794_s1 + $0x138] sm:$0xff]  ;;  %v1802_v37 = vcombine.high %v66_v59, %v70_v29  ;;  %v1799_v38 = vcombine.low %v65_v25, %v69_v28 }
  0x30   :  { %v1794_v44 = vcombine.high %v58_v35, %v62_v36 }
  0x32   :  { %881 = vmatpush2.bf16.msra.mxu0 %v1851_v43  ;;  %922 = vmatpush2.bf16.msra.mxu1 %v1853_v45  ;;  %v50_v43 = vld [vmem:[%s2794_s1 + $0xd8] sm:$0xff]  ;;  %v1791_v45 = vcombine.low %v57_v31, %v61_v32 }
  0x33   :  { %882 = vmatprep.subr.bf16.mxu0 %v1844_v47  ;;  %923 = vmatprep.subr.bf16.mxu1 %v1846_v49  ;;  %v41_v47 = vld [vmem:[%s2794_s1 + $0x90] sm:$0xff]  ;;  %v1793_v49 = vcombine.low %v58_v35, %v62_v36 }
  0x34   :  { %v1776_v60 = vcombine.high %v41_v47, %v45_v48 }
  0x36   :  { %883 = vmatpush2.bf16.msra.mxu0 %v1843_v52  ;;  %924 = vmatpush2.bf16.msra.mxu1 %v1845_v54  ;;  %v46_v52 = vld [vmem:[%s2794_s1 + $0xb8] sm:$0xff]  ;;  %v1783_v54 = vcombine.low %v49_v39, %v53_v40 }
  0x37   :  { %884 = vmatprep.subr.bf16.mxu0 %v1836_v55  ;;  %925 = vmatprep.subr.bf16.mxu1 %v1838_v58  ;;  %v33_v55 = vld [vmem:[%s2794_s1 + $0x50] sm:$0xff]  ;;  %v1778_v63 = vcombine.high %v42_v51, %v46_v52 }
  0x38   :  { %v1768_v5 = vcombine.high %v33_v55, %v37_v57 }
  0x3a   :  { %885 = vmatpush2.bf16.msra.mxu0 %v1835_v62  ;;  %926 = vmatpush2.bf16.msra.mxu1 %v1837_v0  ;;  %v38_v62 = vld [vmem:[%s2794_s1 + $0x78] sm:$0xff]  ;;  %v1775_v0 = vcombine.low %v41_v47, %v45_v48 }
  0x3b   :  { %886 = vmatprep.subr.bf16.mxu0 %v1828_v1  ;;  %927 = vmatprep.subr.bf16.mxu1 %v1830_v4  ;;  %v25_v1 = vld [vmem:[%s2794_s1 + $0x10] sm:$0xff]  ;;  %v1777_v4 = vcombine.low %v42_v51, %v46_v52  ;;  %v1770_v8 = vcombine.high %v34_v61, %v38_v62 }
  0x3c   :  { %v1760_v13 = vcombine.high %v25_v1, %v29_v2 }
  0x3e   :  { %887 = vmatpush2.bf16.msra.mxu0 %v1827_v7  ;;  %928 = vmatpush2.bf16.msra.mxu1 %v1829_v9  ;;  %v30_v7 = vld [vmem:[%s2794_s1 + $0x38] sm:$0xff]  ;;  %v1767_v9 = vcombine.low %v33_v55, %v37_v57 }
  0x3f   :  { %888 = vmatprep.subr.bf16.mxu0 %v1820_v10  ;;  %929 = vmatprep.subr.bf16.mxu1 %v1822_v12  ;;  %v145_v10 = vld [vmem:[%s2794_s1 + $0x3d0] sm:$0xff]  ;;  %v1769_v12 = vcombine.low %v34_v61, %v38_v62  ;;  %v1762_v16 = vcombine.high %v26_v6, %v30_v7 }
  0x40   :  { %v1880_v19 = vcombine.high %v145_v10, %v149_v11 }
  0x42   :  { %889 = vmatpush2.bf16.msra.mxu0 %v1819_v15  ;;  %930 = vmatpush2.bf16.msra.mxu1 %v1821_v17  ;;  %v150_v15 = vld [vmem:[%s2794_s1 + $0x3f8] sm:$0xff]  ;;  %v1759_v17 = vcombine.low %v25_v1, %v29_v2 }
  0x43   :  { %940 = vmatprep.subr.bf16.mxu0 %v1816_v18  ;;  %981 = vmatprep.subr.bf16.mxu1 %v1818_v20  ;;  %v1761_v18 = vcombine.low %v26_v6, %v30_v7  ;;  %v1882_v20 = vcombine.high %v146_v14, %v150_v15 }
  0x45   :  { %891 = vmatmul.mubr.bf16.vlgmr.msra.gmra.mxu0 %v2393_v22  ;;  %932 = vmatmul.mubr.bf16.vlgmr.msra.gmra.mxu1 %v2393_v22 }
  0x46   :  { %941 = vmatpush1.bf16.msra.mxu0 %v1815_v24  ;;  %982 = vmatpush1.bf16.msra.mxu1 %v1817_v26 }
  0x47   :  { %942 = vmatprep.subr.bf16.mxu0 %v1808_v27  ;;  %983 = vmatprep.subr.bf16.mxu1 %v1810_v56 }
  0x48   :  { %972 = vmatprep.mubr.bf16.mxu0 %v2270_v3  ;;  %1013 = vmatprep.mubr.bf16.mxu1 %v2270_v3  ;;  %v54_v3 = vld [vmem:[%s2794_s1 + $0xf8] sm:$0xff] }
  0x49   :  { %v1786_v53 = vcombine.high %v50_v43, %v54_v3  ;;  %v1785_v58 = vcombine.low %v50_v43, %v54_v3 }
  0x4a   :  { %943 = vmatpush1.bf16.msra.mxu0 %v1807_v30  ;;  %984 = vmatpush1.bf16.msra.mxu1 %v1809_v33 }
  0x4b   :  { %944 = vmatprep.subr.bf16.mxu0 %v1800_v34  ;;  %985 = vmatprep.subr.bf16.mxu1 %v1802_v37 }
  0x4e   :  { %945 = vmatpush1.bf16.msra.mxu0 %v1799_v38  ;;  %986 = vmatpush1.bf16.msra.mxu1 %v1801_v41 }
  0x4f   :  { %946 = vmatprep.subr.bf16.mxu0 %v1792_v42  ;;  %987 = vmatprep.subr.bf16.mxu1 %v1794_v44 }
  0x52   :  { %947 = vmatpush1.bf16.msra.mxu0 %v1791_v45  ;;  %988 = vmatpush1.bf16.msra.mxu1 %v1793_v49 }
  0x53   :  { %948 = vmatprep.subr.bf16.mxu0 %v1784_v50  ;;  %989 = vmatprep.subr.bf16.mxu1 %v1786_v53 }
  0x56   :  { %949 = vmatpush1.bf16.msra.mxu0 %v1783_v54  ;;  %990 = vmatpush1.bf16.msra.mxu1 %v1785_v58 }
  0x57   :  { %950 = vmatprep.subr.bf16.mxu0 %v1776_v60  ;;  %991 = vmatprep.subr.bf16.mxu1 %v1778_v63 }
  0x5a   :  { %951 = vmatpush1.bf16.msra.mxu0 %v1775_v0  ;;  %992 = vmatpush1.bf16.msra.mxu1 %v1777_v4 }
  0x5b   :  { %952 = vmatprep.subr.bf16.mxu0 %v1768_v5  ;;  %993 = vmatprep.subr.bf16.mxu1 %v1770_v8 }
  0x5e   :  { %953 = vmatpush1.bf16.msra.mxu0 %v1767_v9  ;;  %994 = vmatpush1.bf16.msra.mxu1 %v1769_v12 }
  0x5f   :  { %954 = vmatprep.subr.bf16.mxu0 %v1760_v13  ;;  %995 = vmatprep.subr.bf16.mxu1 %v1762_v16 }
  0x60   :  { %10 = vsyncpa [#allocation3], 0  ;;  %v138_v24 = vld [vmem:[%s2794_s1 + $0x398] sm:$0xff]  ;;  %v1879_v26 = vcombine.low %v145_v10, %v149_v11  ;;  %v1881_v27 = vcombine.low %v146_v14, %v150_v15  ;;  %v1872_v28 = vcombine.high %v137_v21, %v141_v23  ;;  %v129_v59 = vld [vmem:[%s2794_s1 + $0x350] sm:$0xff]  ;;  %v1871_v32 = vcombine.low %v137_v21, %v141_v23  ;;  %s2130_s12 = smov [#allocation2]  }
  0x61   :  { %v142_v25 = vld [vmem:[%s2794_s1 + $0x3b8] sm:$0xff]  ;;  %v133_v29 = vld [vmem:[%s2794_s1 + $0x370] sm:$0xff]  ;;  %vm1723_vm0 = vcmask 41984   ;;  %s1746_s13 = sshll.u32 %s2130_s12, 4  ;;  %s1747_s13 = int_to_ptr.vmem [resolvable:$true] %s1746_s13 }
  0x62   :  { %955 = vmatpush1.bf16.msra.mxu0 %v1759_v17  ;;  %996 = vmatpush1.bf16.msra.mxu1 %v1761_v18  ;;  %v1874_v56 = vcombine.high %v138_v24, %v142_v25  ;;  %v130_v30 = vld [vmem:[%s2794_s1 + $0x358] sm:$0xff]  ;;  %v1873_v33 = vcombine.low %v138_v24, %v142_v25  ;;  %v1864_v34 = vcombine.high %v129_v59, %v133_v29  ;;  %v121_v36 = vld [vmem:[%s2794_s1 + $0x310] sm:$0xff]  ;;  %s2106_s14 = scalar_lea.vmem %s1747_s13, 32  ;;  %p2111_p1 = scmp.lt.s32.totalorder %s1747_s13, %s1747_s13 }
  0x63   :  { %956 = vmatprep.subr.bf16.mxu0 %v1880_v19  ;;  %997 = vmatprep.subr.bf16.mxu1 %v1882_v20  ;;  %v134_v31 = vld [vmem:[%s2794_s1 + $0x378] sm:$0xff]  ;;  %v125_v37 = vld [vmem:[%s2794_s1 + $0x330] sm:$0xff]  ;;  %v1863_v40 = vcombine.low %v129_v59, %v133_v29  ;;  %v2055_v59 = vld [vmem:[%s2796_s3 + $0xe0] sm:$0xff]   ;;  %p2107_p0 = scmp.ne.s32.totalorder %s1747_s13, %s2106_s14  ;;  %p2112_p2 = scmp.lt.s32.totalorder %s2106_s14, %s2106_s14 }
  0x64   :  { %v1866_v35 = vcombine.high %v130_v30, %v134_v31  ;;  %v122_v38 = vld [vmem:[%s2794_s1 + $0x318] sm:$0xff]  ;;  %v1865_v41 = vcombine.low %v130_v30, %v134_v31  ;;  %v1856_v42 = vcombine.high %v121_v36, %v125_v37  ;;  %v113_v3 = vld [vmem:[%s2794_s1 + $0x2d0] sm:$0xff]  ;;  %v1855_v48 = vcombine.low %v121_v36, %v125_v37  ;;  %v2056_v29 = vld [vmem:[%s2796_s3 + $0x20] sm:$0xff]  }
  0x65   :  { %v126_v39 = vld [vmem:[%s2794_s1 + $0x338] sm:$0xff]  ;;  %v117_v44 = vld [vmem:[%s2794_s1 + $0x2f0] sm:$0xff]  ;;  %v2057_v30 = vld [vmem:[%s2796_s3 + $0xa0] sm:$0xff]   ;;  %p2113_p3 = por %p2112_p2, %p2111_p1 }
  0x66   :  { %957 = vmatpush2.bf16.msra.mxu0 %v1879_v26  ;;  %998 = vmatpush2.bf16.msra.mxu1 %v1881_v27  ;;  %v1858_v43 = vcombine.high %v122_v38, %v126_v39  ;;  %v114_v45 = vld [vmem:[%s2794_s1 + $0x2d8] sm:$0xff]  ;;  %v1857_v49 = vcombine.low %v122_v38, %v126_v39  ;;  %v1848_v50 = vcombine.high %v113_v3, %v117_v44  ;;  %v105_v52 = vld [vmem:[%s2794_s1 + $0x290] sm:$0xff]  ;;  %v2050_v26 = vld [vmem:[%s2796_s3 + $0x68] sm:$0xff]  }
  0x67   :  { %958 = vmatprep.subr.bf16.mxu0 %v1872_v28  ;;  %999 = vmatprep.subr.bf16.mxu1 %v1874_v56  ;;  %v118_v47 = vld [vmem:[%s2794_s1 + $0x2f8] sm:$0xff]  ;;  %v109_v53 = vld [vmem:[%s2794_s1 + $0x2b0] sm:$0xff]  ;;  %v1847_v57 = vcombine.low %v113_v3, %v117_v44  ;;  %v2052_v27 = vld [vmem:[%s2796_s3 + $0x28] sm:$0xff]   ;;  %p2114_p4 = pnand %p2113_p3, %p2107_p0 }
  0x68   :  { %v1850_v51 = vcombine.high %v114_v45, %v118_v47  ;;  %v106_v54 = vld [vmem:[%s2794_s1 + $0x298] sm:$0xff]  ;;  %v1849_v58 = vcombine.low %v114_v45, %v118_v47  ;;  %v1840_v60 = vcombine.high %v105_v52, %v109_v53  ;;  %v97_v62 = vld [vmem:[%s2794_s1 + $0x250] sm:$0xff]  ;;  %v1839_v2 = vcombine.low %v105_v52, %v109_v53  ;;  %v2053_v28 = vld [vmem:[%s2796_s3 + $0xa8] sm:$0xff]  }
  0x69   :  { %v110_v55 = vld [vmem:[%s2794_s1 + $0x2b8] sm:$0xff]  ;;  %v101_v63 = vld [vmem:[%s2794_s1 + $0x270] sm:$0xff]  ;;  %v2054_v56 = vld [vmem:[%s2796_s3 + $0x60] sm:$0xff]   ;;  %v159_v52 = vsub.s32 1, %v2233_v46  ;;  %v167_v53 = vsub.s32 3, %v2233_v46 }
  0x6a   :  { %959 = vmatpush2.bf16.msra.mxu0 %v1871_v32  ;;  %1000 = vmatpush2.bf16.msra.mxu1 %v1873_v33  ;;  %v1842_v61 = vcombine.high %v106_v54, %v110_v55  ;;  %v98_v0 = vld [vmem:[%s2794_s1 + $0x258] sm:$0xff]  ;;  %v1841_v4 = vcombine.low %v106_v54, %v110_v55  ;;  %v1832_v5 = vcombine.high %v97_v62, %v101_v63  ;;  %v89_v7 = vld [vmem:[%s2794_s1 + $0x210] sm:$0xff]  ;;  %v2066_v39 = vld [vmem:[%s2796_s3 + $0x48] sm:$0xff]  }
  0x6b   :  { %960 = vmatprep.subr.bf16.mxu0 %v1864_v34  ;;  %1001 = vmatprep.subr.bf16.mxu1 %v1866_v35  ;;  %v102_v1 = vld [vmem:[%s2794_s1 + $0x278] sm:$0xff]  ;;  %v93_v8 = vld [vmem:[%s2794_s1 + $0x230] sm:$0xff]  ;;  %v1831_v11 = vcombine.low %v97_v62, %v101_v63  ;;  %v2071_v3 = vld [vmem:[%s2796_s3 + $0xc0] sm:$0xff]  }
  0x6c   :  { %v1834_v6 = vcombine.high %v98_v0, %v102_v1  ;;  %v90_v9 = vld [vmem:[%s2794_s1 + $0x218] sm:$0xff]  ;;  %v1833_v12 = vcombine.low %v98_v0, %v102_v1  ;;  %v1824_v13 = vcombine.high %v89_v7, %v93_v8  ;;  %v1823_v15 = vcombine.low %v89_v7, %v93_v8  ;;  %v2046_v21 = vld [vmem:[%s2796_s3 + $0x70] sm:$0xff]   ;;  %v2072_v44 = vld [vmem:[%s2796_s3] sm:$0xff]  }
  0x6d   :  { %v94_v10 = vld [vmem:[%s2794_s1 + $0x238] sm:$0xff]  ;;  %v2047_v23 = vld [vmem:[%s2796_s3 + $0xf0] sm:$0xff]   ;;  %v2073_v45 = vld [vmem:[%s2796_s3 + $0x80] sm:$0xff]  }
  0x6e   :  { %961 = vmatpush2.bf16.msra.mxu0 %v1863_v40  ;;  %1002 = vmatpush2.bf16.msra.mxu1 %v1865_v41  ;;  %v1826_v14 = vcombine.high %v90_v9, %v94_v10  ;;  %v1825_v16 = vcombine.low %v90_v9, %v94_v10  ;;  %v2042_v17 = vld [vmem:[%s2796_s3 + $0x78] sm:$0xff]   ;;  %v2048_v24 = vld [vmem:[%s2796_s3 + $0x30] sm:$0xff]   ;;  %v2067_v40 = vld [vmem:[%s2796_s3 + $0xc8] sm:$0xff]  }
  0x6f   :  { %962 = vmatprep.subr.bf16.mxu0 %v1856_v42  ;;  %1003 = vmatprep.subr.bf16.mxu1 %v1858_v43  ;;  %v2043_v18 = vld [vmem:[%s2796_s3 + $0xf8] sm:$0xff]   ;;  %v2049_v25 = vld [vmem:[%s2796_s3 + $0xb0] sm:$0xff]   ;;  %v2068_v41 = vld [vmem:[%s2796_s3 + $0x8] sm:$0xff]  }
  0x70   :  { %v2044_v19 = vld [vmem:[%s2796_s3 + $0x38] sm:$0xff]   ;;  %v2062_v35 = vld [vmem:[%s2796_s3 + $0x50] sm:$0xff]   ;;  %v2069_v42 = vld [vmem:[%s2796_s3 + $0x88] sm:$0xff]  }
  0x71   :  { %v2045_v20 = vld [vmem:[%s2796_s3 + $0xb8] sm:$0xff]   ;;  %v2063_v36 = vld [vmem:[%s2796_s3 + $0xd0] sm:$0xff]   ;;  %v2070_v43 = vld [vmem:[%s2796_s3 + $0x40] sm:$0xff]  }
  0x72   :  { %963 = vmatpush2.bf16.msra.mxu0 %v1855_v48  ;;  %1004 = vmatpush2.bf16.msra.mxu1 %v1857_v49  ;;  %v2058_v31 = vld [vmem:[%s2796_s3 + $0x58] sm:$0xff]   ;;  %v2064_v37 = vld [vmem:[%s2796_s3 + $0x10] sm:$0xff]   ;;  %v155_v49 = vsub.s32 0, %v2233_v46 }
  0x73   :  { %964 = vmatprep.subr.bf16.mxu0 %v1848_v50  ;;  %1005 = vmatprep.subr.bf16.mxu1 %v1850_v51  ;;  %v2059_v32 = vld [vmem:[%s2796_s3 + $0xd8] sm:$0xff]   ;;  %v2065_v38 = vld [vmem:[%s2796_s3 + $0x90] sm:$0xff]   ;;  %v2678_v50 = vld [vmem:[%s2795_s2] sm:$0xff]  ;;  %v163_v51 = vsub.s32 2, %v2233_v46 }
  0x74   :  { %v2060_v33 = vld [vmem:[%s2796_s3 + $0x18] sm:$0xff]   ;;  %v156_v54 = vrot.slane %v2678_v50, %v155_v49 }
  0x75   :  { %v2061_v34 = vld [vmem:[%s2796_s3 + $0x98] sm:$0xff]   ;;  %v164_v55 = vrot.slane %v2678_v50, %v163_v51 }
  0x76   :  { %965 = vmatpush2.bf16.msra.mxu0 %v1847_v57  ;;  %1006 = vmatpush2.bf16.msra.mxu1 %v1849_v58  ;;  %v2074_v47 = vld [vmem:[%s2796_s3 + $0x178] sm:$0xff]   ;;  %v160_v57 = vrot.slane %v2678_v50, %v159_v52 }
  0x77   :  { %966 = vmatprep.subr.bf16.mxu0 %v1840_v60  ;;  %1007 = vmatprep.subr.bf16.mxu1 %v1842_v61  ;;  %v2075_v48 = vld [vmem:[%s2796_s3 + $0x1f8] sm:$0xff]   ;;  %v168_v60 = vrot.slane %v2678_v50, %v167_v53 }
  0x7a   :  { %967 = vmatpush2.bf16.msra.mxu0 %v1839_v2  ;;  %1008 = vmatpush2.bf16.msra.mxu1 %v1841_v4 }
  0x7b   :  { %968 = vmatprep.subr.bf16.mxu0 %v1832_v5  ;;  %1009 = vmatprep.subr.bf16.mxu1 %v1834_v6 }
  0x7e   :  { %969 = vmatpush2.bf16.msra.mxu0 %v1831_v11  ;;  %1010 = vmatpush2.bf16.msra.mxu1 %v1833_v12 }
  0x7f   :  { %970 = vmatprep.subr.bf16.mxu0 %v1824_v13  ;;  %1011 = vmatprep.subr.bf16.mxu1 %v1826_v14 }
  0x82   :  { %971 = vmatpush2.bf16.msra.mxu0 %v1823_v15  ;;  %1012 = vmatpush2.bf16.msra.mxu1 %v1825_v16  ;;  %v2076_v15 = vld [vmem:[%s2796_s3 + $0x138] sm:$0xff]  }
  0x83   :  { %1948 = vmatprep.subr.bf16.mxu0 %v2042_v17  ;;  %1970 = vmatprep.subr.bf16.mxu1 %v2043_v18  ;;  %v2077_v18 = vld [vmem:[%s2796_s3 + $0x1b8] sm:$0xff]  }
  0x85   :  { %973 = vmatmul.mubr.bf16.vlgmr.msra.gmra.mxu0 %v2393_v22  ;;  %1014 = vmatmul.mubr.bf16.vlgmr.msra.gmra.mxu1 %v2393_v22  ;;  %v2051_v22 = vld [vmem:[%s2796_s3 + $0xe8] sm:$0xff]  }
  0x86   :  { %1949 = vmatpush3.bf16.msra.mxu0 %v2044_v19  ;;  %1971 = vmatpush3.bf16.msra.mxu1 %v2045_v20  ;;  %v2078_v19 = vld [vmem:[%s2796_s3 + $0x170] sm:$0xff]  }
  0x87   :  { %1950 = vmatprep.subr.bf16.mxu0 %v2046_v21  ;;  %1972 = vmatprep.subr.bf16.mxu1 %v2047_v23  ;;  %v2079_v20 = vld [vmem:[%s2796_s3 + $0x1f0] sm:$0xff]  }
  0x88   :  { %v2080_v21 = vld [vmem:[%s2796_s3 + $0x130] sm:$0xff]  }
  0x89   :  { %v2081_v23 = vld [vmem:[%s2796_s3 + $0x1b0] sm:$0xff]  }
  0x8a   :  { %1951 = vmatpush3.bf16.msra.mxu0 %v2048_v24  ;;  %1973 = vmatpush3.bf16.msra.mxu1 %v2049_v25  ;;  %v2082_v24 = vld [vmem:[%s2796_s3 + $0x168] sm:$0xff]  }
  0x8b   :  { %1952 = vmatprep.subr.bf16.mxu0 %v2050_v26  ;;  %1974 = vmatprep.subr.bf16.mxu1 %v2051_v22  ;;  %v2083_v25 = vld [vmem:[%s2796_s3 + $0x1e8] sm:$0xff]  }
  0x8c   :  { %v2084_v26 = vld [vmem:[%s2796_s3 + $0x128] sm:$0xff]  }
  0x8d   :  { %v2085_v22 = vld [vmem:[%s2796_s3 + $0x1a8] sm:$0xff]  }
  0x8e   :  { %1953 = vmatpush3.bf16.msra.mxu0 %v2052_v27  ;;  %1975 = vmatpush3.bf16.msra.mxu1 %v2053_v28  ;;  %v2086_v27 = vld [vmem:[%s2796_s3 + $0x160] sm:$0xff]  }
  0x8f   :  { %1954 = vmatprep.subr.bf16.mxu0 %v2054_v56  ;;  %1976 = vmatprep.subr.bf16.mxu1 %v2055_v59  ;;  %v2087_v28 = vld [vmem:[%s2796_s3 + $0x1e0] sm:$0xff]  }
  0x90   :  { %v2088_v56 = vld [vmem:[%s2796_s3 + $0x120] sm:$0xff]  }
  0x91   :  { %v2089_v59 = vld [vmem:[%s2796_s3 + $0x1a0] sm:$0xff]  }
  0x92   :  { %1955 = vmatpush3.bf16.msra.mxu0 %v2056_v29  ;;  %1977 = vmatpush3.bf16.msra.mxu1 %v2057_v30  ;;  %v2090_v29 = vld [vmem:[%s2796_s3 + $0x158] sm:$0xff]  }
  0x93   :  { %1956 = vmatprep.subr.bf16.mxu0 %v2058_v31  ;;  %1978 = vmatprep.subr.bf16.mxu1 %v2059_v32  ;;  %v2091_v30 = vld [vmem:[%s2796_s3 + $0x1d8] sm:$0xff]  }
  0x94   :  { %v2092_v31 = vld [vmem:[%s2796_s3 + $0x118] sm:$0xff]  }
  0x95   :  { %v2093_v32 = vld [vmem:[%s2796_s3 + $0x198] sm:$0xff]  }
  0x96   :  { %1957 = vmatpush3.bf16.msra.mxu0 %v2060_v33  ;;  %1979 = vmatpush3.bf16.msra.mxu1 %v2061_v34  ;;  %v2094_v33 = vld [vmem:[%s2796_s3 + $0x150] sm:$0xff]  }
  0x97   :  { %1958 = vmatprep.subr.bf16.mxu0 %v2062_v35  ;;  %1980 = vmatprep.subr.bf16.mxu1 %v2063_v36  ;;  %v2095_v34 = vld [vmem:[%s2796_s3 + $0x1d0] sm:$0xff]  }
  0x98   :  { %v2096_v35 = vld [vmem:[%s2796_s3 + $0x110] sm:$0xff]  }
  0x99   :  { %v2097_v36 = vld [vmem:[%s2796_s3 + $0x190] sm:$0xff]  }
  0x9a   :  { %1959 = vmatpush3.bf16.msra.mxu0 %v2064_v37  ;;  %1981 = vmatpush3.bf16.msra.mxu1 %v2065_v38  ;;  %v2098_v37 = vld [vmem:[%s2796_s3 + $0x148] sm:$0xff]  }
  0x9b   :  { %1960 = vmatprep.subr.bf16.mxu0 %v2066_v39  ;;  %1982 = vmatprep.subr.bf16.mxu1 %v2067_v40  ;;  %v2099_v38 = vld [vmem:[%s2796_s3 + $0x1c8] sm:$0xff]  }
  0x9c   :  { %v2100_v39 = vld [vmem:[%s2796_s3 + $0x108] sm:$0xff]  }
  0x9d   :  { %v2101_v40 = vld [vmem:[%s2796_s3 + $0x188] sm:$0xff]  }
  0x9e   :  { %1961 = vmatpush3.bf16.msra.mxu0 %v2068_v41  ;;  %1983 = vmatpush3.bf16.msra.mxu1 %v2069_v42  ;;  %v2102_v41 = vld [vmem:[%s2796_s3 + $0x140] sm:$0xff]  }
  0x9f   :  { %1962 = vmatprep.subr.bf16.mxu0 %v2070_v43  ;;  %1984 = vmatprep.subr.bf16.mxu1 %v2071_v3  ;;  %v2103_v42 = vld [vmem:[%s2796_s3 + $0x1c0] sm:$0xff]  }
  0xa0   :  { %v2104_v43 = vld [vmem:[%s2796_s3 + $0x100] sm:$0xff]  }
  0xa1   :  { %v2105_v3 = vld [vmem:[%s2796_s3 + $0x180] sm:$0xff]  }
  0xa2   :  { %1963 = vmatpush3.bf16.msra.mxu0 %v2072_v44  ;;  %1985 = vmatpush3.bf16.msra.mxu1 %v2073_v45  ;;  %v171_v44 = vsub.s32 4, %v2233_v46  ;;  %v179_v45 = vsub.s32 6, %v2233_v46 }
  0xa3   :  { %1992 = vmatprep.subr.bf16.mxu0 %v2074_v47  ;;  %2014 = vmatprep.subr.bf16.mxu1 %v2075_v48  ;;  %v175_v47 = vsub.s32 5, %v2233_v46  ;;  %v183_v48 = vsub.s32 7, %v2233_v46 }
  0xa4   :  { %v172_v49 = vrot.slane %v2678_v50, %v171_v44  ;;  %v180_v51 = vrot.slane %v2678_v50, %v179_v45 }
  0xa5   :  { %v176_v52 = vrot.slane %v2678_v50, %v175_v47 }
 0x105   :  { %v892_v58 = vpop.f32.mrf.mxu0  ;;  %v933_v62 = vpop.f32.mrf.mxu1 }
 0x106   :  { %v893_v61 = vadd.f32 %v892_v58, %v156_v54  ;;  %v934_v63 = vadd.f32 %v933_v62, %v164_v55  ;;  %v184_v54 = vrot.slane %v2678_v50, %v183_v48  ;;  %v2129_v50 = vmov 6  }
 0x107   :  { %v894_v0 = vpop.f32.mrf.mxu0  ;;  %v935_v2 = vpop.f32.mrf.mxu1  ;;  %2041 = vset.pattern.permute.xlu0 %v2129_v50 }
 0x108   :  { %v895_v1 = vadd.f32 %v894_v0, %v160_v57  ;;  %v1022_v4 = vmax.f32 %v893_v61, 0.0  ;;  %v1024_v5 = vmax.f32 %v934_v63, 0.0  ;;  %v936_v6 = vadd.f32 %v935_v2, %v168_v60 }
 0x109   :  { %v896_v7 = vpop.f32.mrf.mxu0  ;;  %v937_v9 = vpop.f32.mrf.mxu1 }
 0x10a   :  { %v1023_v8 = vmax.f32 %v895_v1, 0.0  ;;  %v1025_v10 = vmax.f32 %v936_v6, 0.0  ;;  %v1032_v12 = vpack.c.bf16 %v1024_v5, %v1024_v5  ;;  %v1030_v16 = vpack.c.bf16 %v1022_v4, %v1022_v4 }
 0x10b   :  { %v897_v11 = vpop.f32.mrf.mxu0  ;;  %v938_v14 = vpop.f32.mrf.mxu1 }
 0x10c   :  { %v1031_v13 = vpack.c.bf16 %v1023_v8, %v1023_v8  ;;  %v1033_v17 = vpack.c.bf16 %v1025_v10, %v1025_v10 }
 0x10e   :  { %1589 = vmatprep.mubr.bf16.mxu0 %v1031_v13  ;;  %1629 = vmatprep.mubr.bf16.mxu1 %v1033_v17 }
 0x10f   :  { %1590 = vmatmul.mubr.bf16.vlgmr.msra.gmra.mxu0 %v1030_v16  ;;  %1630 = vmatmul.mubr.bf16.vlgmr.msra.gmra.mxu1 %v1032_v12 }
 0x110   :  { %1993 = vmatpush3.bf16.msra.mxu0 %v2076_v15  ;;  %2015 = vmatpush3.bf16.msra.mxu1 %v2077_v18 }
 0x111   :  { %1994 = vmatprep.subr.bf16.mxu0 %v2078_v19  ;;  %2016 = vmatprep.subr.bf16.mxu1 %v2079_v20 }
 0x114   :  { %1995 = vmatpush3.bf16.msra.mxu0 %v2080_v21  ;;  %2017 = vmatpush3.bf16.msra.mxu1 %v2081_v23  ;;  %v1883_v21 = vld [vmem:[%s2797_s4] ss:$0 sm:$0xff] }
 0x115   :  { %1996 = vmatprep.subr.bf16.mxu0 %v2082_v24  ;;  %2018 = vmatprep.subr.bf16.mxu1 %v2083_v25 }
 0x118   :  { %1997 = vmatpush3.bf16.msra.mxu0 %v2084_v26  ;;  %2019 = vmatpush3.bf16.msra.mxu1 %v2085_v22 }
 0x119   :  { %1998 = vmatprep.subr.bf16.mxu0 %v2086_v27  ;;  %2020 = vmatprep.subr.bf16.mxu1 %v2087_v28 }
 0x11c   :  { %1999 = vmatpush3.bf16.msra.mxu0 %v2088_v56  ;;  %2021 = vmatpush3.bf16.msra.mxu1 %v2089_v59 }
 0x11d   :  { %2000 = vmatprep.subr.bf16.mxu0 %v2090_v29  ;;  %2022 = vmatprep.subr.bf16.mxu1 %v2091_v30 }
 0x120   :  { %2001 = vmatpush3.bf16.msra.mxu0 %v2092_v31  ;;  %2023 = vmatpush3.bf16.msra.mxu1 %v2093_v32 }
 0x121   :  { %2002 = vmatprep.subr.bf16.mxu0 %v2094_v33  ;;  %2024 = vmatprep.subr.bf16.mxu1 %v2095_v34 }
 0x124   :  { %2003 = vmatpush3.bf16.msra.mxu0 %v2096_v35  ;;  %2025 = vmatpush3.bf16.msra.mxu1 %v2097_v36 }
 0x125   :  { %2004 = vmatprep.subr.bf16.mxu0 %v2098_v37  ;;  %2026 = vmatprep.subr.bf16.mxu1 %v2099_v38 }
 0x128   :  { %2005 = vmatpush3.bf16.msra.mxu0 %v2100_v39  ;;  %2027 = vmatpush3.bf16.msra.mxu1 %v2101_v40 }
 0x129   :  { %2006 = vmatprep.subr.bf16.mxu0 %v2102_v41  ;;  %2028 = vmatprep.subr.bf16.mxu1 %v2103_v42 }
 0x12c   :  { %2007 = vmatpush3.bf16.msra.mxu0 %v2104_v43  ;;  %2029 = vmatpush3.bf16.msra.mxu1 %v2105_v3 }
 0x145   :  { %v974_v53 = vpop.f32.mrf.mxu0  ;;  %v1015_v57 = vpop.f32.mrf.mxu1 }
 0x146   :  { %v975_v55 = vadd.f32 %v974_v53, %v172_v49  ;;  %v1016_v58 = vadd.f32 %v1015_v57, %v180_v51 }
 0x147   :  { %v976_v60 = vpop.f32.mrf.mxu0  ;;  %v1017_v62 = vpop.f32.mrf.mxu1 }
 0x148   :  { %v977_v61 = vadd.f32 %v976_v60, %v176_v52  ;;  %v1026_v63 = vmax.f32 %v975_v55, 0.0  ;;  %v1028_v0 = vmax.f32 %v1016_v58, 0.0  ;;  %v1018_v1 = vadd.f32 %v1017_v62, %v184_v54 }
 0x149   :  { %v978_v2 = vpop.f32.mrf.mxu0  ;;  %v1019_v4 = vpop.f32.mrf.mxu1 }
 0x14a   :  { %v1027_v46 = vmax.f32 %v977_v61, 0.0  ;;  %v1029_v5 = vmax.f32 %v1018_v1, 0.0  ;;  %v1036_v7 = vpack.c.bf16 %v1028_v0, %v1028_v0  ;;  %v1034_v10 = vpack.c.bf16 %v1026_v63, %v1026_v63 }
 0x14b   :  { %v979_v6 = vpop.f32.mrf.mxu0  ;;  %v1020_v9 = vpop.f32.mrf.mxu1 }
 0x14c   :  { %v1035_v8 = vpack.c.bf16 %v1027_v46, %v1027_v46  ;;  %v1037_v11 = vpack.c.bf16 %v1029_v5, %v1029_v5 }
 0x14e   :  { %1669 = vmatprep.mubr.bf16.mxu0 %v1035_v8  ;;  %1709 = vmatprep.mubr.bf16.mxu1 %v1037_v11 }
 0x14f   :  { %1670 = vmatmul.mubr.bf16.vlgmr.msra.gmra.mxu0 %v1034_v10  ;;  %1710 = vmatmul.mubr.bf16.vlgmr.msra.gmra.mxu1 %v1036_v7 }
 0x1cf   :  { %v1964_v12 = vpop.f32.mrf.mxu0  ;;  %v1986_v13 = vpop.f32.mrf.mxu1 }
 0x1d1   :  { %v1965_v14 = vpop.f32.mrf.mxu0  ;;  %v1987_v15 = vpop.f32.mrf.mxu1 }
 0x1d2   :  { %v1966_v20 = vadd.f32 %v1965_v14, %v1964_v12  ;;  %v1988_v25 = vadd.f32 %v1987_v15, %v1986_v13 }
 0x1d3   :  { %v1967_v16 = vpop.f32.mrf.mxu0  ;;  %v1989_v17 = vpop.f32.mrf.mxu1 }
 0x1d4   :  { %v1592_v23 = vadd.f32 %v1966_v20, %v1883_v21 }
 0x1d5   :  { %v1968_v18 = vpop.f32.mrf.mxu0  ;;  %v1990_v19 = vpop.f32.mrf.mxu1 }
 0x1d6   :  { %v1632_v27 = vadd.f32 %v1988_v25, %v1592_v23 }
 0x20f   :  { %v2008_v24 = vpop.f32.mrf.mxu0  ;;  %v2030_v26 = vpop.f32.mrf.mxu1 }
 0x211   :  { %v2009_v22 = vpop.f32.mrf.mxu0  ;;  %v2031_v56 = vpop.f32.mrf.mxu1 }
 0x212   :  { %v2010_v28 = vadd.f32 %v2009_v22, %v2008_v24  ;;  %v2032_v30 = vadd.f32 %v2031_v56, %v2030_v26 }
 0x213   :  { %v2011_v59 = vpop.f32.mrf.mxu0  ;;  %v2033_v31 = vpop.f32.mrf.mxu1 }
 0x214   :  { %v1672_v29 = vadd.f32 %v2010_v28, %v1632_v27 }
 0x215   :  { %v2012_v32 = vpop.f32.mrf.mxu0  ;;  %v2034_v34 = vpop.f32.mrf.mxu1 }
 0x216   :  { %v1712_v33 = vadd.f32 %v2032_v30, %v1672_v29 }
 0x218   :  { %v1724_v35 = vsel %vm1723_vm0, %v1712_v33, 0.0 }
 0x219   :  { %1725 = vadd.xlane.f32.xlu0 %v1724_v35 }
 0x22f   :  { %1719 = vperm.xlu0 %2041, %v1712_v33  }
 0x2a2   :  { %v1726_v36 = vpop.xlane.xlu0 %1725 }
 0x2a3   :  { %v1727_v37 = vrot.slane %v1726_v36, 4 }
 0x2a5   :  { %v1728_v38 = vadd.f32 %v1727_v37, %v1726_v36 }
 0x2a7   :  { %v1729_v39 = vrot.slane %v1728_v38, 2 }
 0x2a9   :  { %v1730_v40 = vadd.f32 %v1729_v39, %v1728_v38 }
 0x2aa   :  { %v1720_v43 = vpop.permute.xlu0 %1719 }
 0x2ab   :  { %v1731_v41 = vrot.slane %v1730_v40, 1  ;;  %v1722_v3 = vadd.f32 %v1720_v43, %v1712_v33 }
 0x2ad   :  { %v1732_v42 = vadd.f32 %v1731_v41, %v1730_v40 }
 0x2af   :  { %2036 = vpush %v1732_v42 }
 0x2e0   :  { %s2037_s4 = spop %2036 }
 0x2e1   :  { %s1736_s11 = smul.f32 0.083333336, %s2037_s4 }
 0x2e3   :  { %v1737_v44 = vstv %s1736_s11 }
 0x2e4   :  { %v1738_v45 = vsub.f32 %v1722_v3, %v1737_v44 }
 0x2e6   :  { %1739 = vst.msk [vmem:[#allocation2] sm:$0x3] %vm1723_vm0, %v1738_v45 }
 0x2e7   :  { %2117 = shalt.err (!%p2114_p4)
}
 0x2e8   :  { %1749 = dma.vmem_to_hbm [thread:$0]  %s1747_s13, 32, %s2798_s5, [#allocation3]  }
 0x2e9   :  { %2126 = dma.done.wait [#allocation3], 32  }
 0x2ea   :  { %2127 = vsyncadd [#allocation3], 4294967264 }
 0x2eb   :  { %1753 = vsyncpa [#allocation3], 1 }

</bundles_post_ra>
